<compile_context>
chip_gen: v7x
topology: tpu7x:2x2x1
jax: 0.10.0
libtpu: 0.0.40
codegen_flags: <defaults>
</compile_context>

<pallas_src>
import math
import jax
import jax.numpy as jnp
from jax.experimental import pallas as pl
from jax.experimental.pallas import tpu as pltpu

# ----------------------------- config (small, forward-consistent shapes) ----
B = 2                      # batch
C = 3                      # image channels
IMG = 32                   # image height/width
PATCH = 16                 # patch size -> 2x2 = 4 patches
P = (IMG // PATCH) ** 2    # 4
N = P + 1                  # tokens incl. cls token = 5
BN = B * N                 # 10
D = 32                     # embed dim
H = 4                      # attention heads
DH = D // H                # 8
HBN = H * BN               # 40 (packed head*token lane dim)
MLP = 4 * D                # 128
DEPTH = 2                  # number of encoder blocks
NUM_CLASSES = 5
CLS_PAD = 128              # lane-dense padded classifier width
REDUCTION = 16             # CBAM channel-attention reduction ratio
DR = max(D // REDUCTION, 1)
EPS = 1e-6                 # timm ViT LayerNorm eps
PD = C * PATCH * PATCH     # flattened patch dim = 768
VEC_W = 128                # lane width of packed vector slabs

# per-block packed-vector slab rows
R_LN1G, R_LN1B, R_BQKV, R_BPROJ, R_LN2G, R_LN2B, R_BFC1, R_BFC2 = range(8)
# head packed-vector slab rows
R_NG, R_NB, R_BCLS, R_WSA, R_WC2 = 0, 1, 2, 3, 4
R_BC2 = R_WC2 + DR          # CBAM channel-MLP second bias
R_BC1 = R_BC2 + 1           # CBAM channel-MLP first bias
assert R_BC1 < 8


# ----------------------------- in-kernel helpers ----------------------------
def _layernorm(x, g, b):
    mu = jnp.mean(x, axis=-1, keepdims=True)
    var = jnp.mean(jnp.square(x - mu), axis=-1, keepdims=True)
    return (x - mu) * jax.lax.rsqrt(var + EPS) * g + b


def _erf(x):
    # Abramowitz & Stegun 7.1.26 rational approximation, |err| <= 1.5e-7,
    # built from exp/div only (both lower cleanly in Mosaic).
    a1, a2, a3, a4, a5 = (0.254829592, -0.284496736, 1.421413741,
                          -1.453152027, 1.061405429)
    pc = 0.3275911
    s = jnp.where(x >= 0.0, 1.0, -1.0)
    ax = jnp.abs(x)
    t = 1.0 / (1.0 + pc * ax)
    poly = t * (a1 + t * (a2 + t * (a3 + t * (a4 + t * a5))))
    return s * (1.0 - poly * jnp.exp(-ax * ax))


def _gelu(x):
    # Exact-erf GELU (timm ViT default), via the polynomial erf above.
    return 0.5 * x * (1.0 + _erf(x * (1.0 / math.sqrt(2.0))))


# ----------------------------- the fused kernel ------------------------------
def fused_vit_cbam_kernel(patches_ref, w_patch_ref, scatter_ref, add_ref,
                          bias_ref, rep_ref, mask_ref, onesbd_ref,
                          wqkv_ref, wproj_ref, wfc1_ref, wfc2_ref, vec_ref,
                          gather_ref, head_mats_ref, head_vec_ref,
                          out_ref):
    f32 = jnp.float32
    bf16 = jnp.bfloat16

    # ---- 1) patch embedding (bf16 MXU) + token assembly via scatter matmul:
    #         x = scatter @ emb + add_slab  (no scratch, no masked row stores)
    emb = jnp.dot(patches_ref[...].astype(bf16), w_patch_ref[...],
                  preferred_element_type=f32)                       # (B*P, D)
    x = jnp.dot(scatter_ref[...], emb,
                preferred_element_type=f32) + add_ref[...]          # (BN, D)

    # attention-support constants (loaded once, reused by every block)
    rep = rep_ref[...]            # (HBN, BN) one-hot replication
    mask_slab = mask_ref[...]     # (HBN, D)  per-head lane masks, row-block h
    ones_bd = onesbd_ref[...]     # (HBN, HBN) block-diagonal ones (denominator)
    bias = bias_ref[...]          # (BN, HBN) cross-batch -1e9 bias, tiled per head
    scale = 1.0 / math.sqrt(DH)

    # ---- 2) transformer encoder blocks (DEPTH unrolled, weights stacked)
    for d in range(DEPTH):
        vec = vec_ref[d]          # (8, 128) packed slab loaded once; slice the value
        ln1g = vec[R_LN1G:R_LN1G + 1, :D]
        ln1b = vec[R_LN1B:R_LN1B + 1, :D]
        bqkv = vec[R_BQKV:R_BQKV + 1, :3 * D]
        bprj = vec[R_BPROJ:R_BPROJ + 1, :D]
        ln2g = vec[R_LN2G:R_LN2G + 1, :D]
        ln2b = vec[R_LN2B:R_LN2B + 1, :D]
        bfc1 = vec[R_BFC1:R_BFC1 + 1, :]          # full 128-lane row (MLP == 128)
        bfc2 = vec[R_BFC2:R_BFC2 + 1, :D]

        # -- attention branch (lane-packed multi-head)
        xn = _layernorm(x, ln1g, ln1b)
        qkv = jnp.dot(xn.astype(bf16), wqkv_ref[d],
                      preferred_element_type=f32) + bqkv            # (BN, 3D)
        q = qkv[:, 0:D] * scale
        k = qkv[:, D:2 * D]
        v = qkv[:, 2 * D:3 * D]

        # Expand K/V to (H*BN, D): row-block h = (k|v) * mask_h.
        k_exp = jnp.dot(rep, k, preferred_element_type=f32) * mask_slab
        v_exp = jnp.dot(rep, v, preferred_element_type=f32) * mask_slab

        # All-head scores in ONE push: s[i, h*BN+j] = q_h[i] . k_h[j]
        s = jax.lax.dot_general(q, k_exp, (((1,), (1,)), ((), ())),
                                preferred_element_type=f32) + bias  # (BN, HBN)
        # Row-global max is a constant shift per row -> per-head softmax exact.
        p = jnp.exp(s - jnp.max(s, axis=-1, keepdims=True))
        # Per-head denominators broadcast across each head block via one matmul.
        denom = jnp.dot(p, ones_bd, preferred_element_type=f32)
        p = p / denom
        ctx = jnp.dot(p, v_exp, preferred_element_type=f32)         # (BN, D)

        attn = jnp.dot(ctx.astype(bf16), wproj_ref[d],
                       preferred_element_type=f32) + bprj
        x = x + attn                                                # residual 1

        # -- MLP branch
        yn = _layernorm(x, ln2g, ln2b)
        h1 = _gelu(jnp.dot(yn.astype(bf16), wfc1_ref[d],
                           preferred_element_type=f32) + bfc1)
        h2 = jnp.dot(h1.astype(bf16), wfc2_ref[d],
                     preferred_element_type=f32) + bfc2
        x = x + h2                                                  # residual 2

    # ---- 3) final norm (cls rows only) + CBAM + classifier
    hvec = head_vec_ref[...]                                        # (8, 128)
    ng = hvec[R_NG:R_NG + 1, :D]
    nb = hvec[R_NB:R_NB + 1, :D]
    bcls = hvec[R_BCLS:R_BCLS + 1, :]                               # (1, CLS_PAD)
    wsa0 = hvec[R_WSA:R_WSA + 1, 0:1]
    wsa1 = hvec[R_WSA:R_WSA + 1, 1:2]
    bsa = hvec[R_WSA:R_WSA + 1, 2:3]
    w_c2 = hvec[R_WC2:R_WC2 + DR, :D]                               # (DR, D)
    b_c2 = hvec[R_BC2:R_BC2 + 1, :D]                                # (1, D)
    b_c1 = hvec[R_BC1:R_BC1 + 1, :DR]                               # (1, DR)
    w_cls = head_mats_ref[0]                                        # (D, CLS_PAD)
    w_c1 = head_mats_ref[1][:, 0:DR]                                # (D, DR)

    # gather cls rows with a one-hot matmul (no scratch round trip)
    cls = jnp.dot(gather_ref[...], x, preferred_element_type=jnp.float32)  # (B, D)
    xc = _layernorm(cls, ng, nb)

    # CBAM channel attention on a (B, D, 1, 1) map: avg-pool == max-pool ==
    # identity, so the shared MLP runs once and its output is doubled.
    ch = jnp.dot(
        jnp.maximum(jnp.dot(xc, w_c1, preferred_element_type=jnp.float32) + b_c1, 0.0),
        w_c2, preferred_element_type=jnp.float32) + b_c2
    x1 = xc * jax.nn.sigmoid(2.0 * ch)

    # CBAM spatial attention: 7x7 conv (pad=3) on a 1x1 map = center taps + bias.
    avg_c = jnp.mean(x1, axis=-1, keepdims=True)                    # (B, 1)
    max_c = jnp.max(x1, axis=-1, keepdims=True)                     # (B, 1)
    att_s = jax.nn.sigmoid(avg_c * wsa0 + max_c * wsa1 + bsa)
    x2 = x1 * att_s

    # classifier (lane-dense 128-wide output; host slices to NUM_CLASSES)
    out_ref[...] = jnp.dot(x2, w_cls, preferred_element_type=jnp.float32) + bcls


# ----------------------------- cost model ------------------------------------
def _mm_flops(m, k, n):
    return 2 * m * k * n


_FLOPS = (
    _mm_flops(B * P, PD, D) + _mm_flops(BN, B * P, D)
    + DEPTH * (_mm_flops(BN, D, 3 * D) + 2 * _mm_flops(HBN, BN, D)
               + _mm_flops(BN, D, HBN) + _mm_flops(BN, HBN, HBN)
               + _mm_flops(BN, HBN, D) + _mm_flops(BN, D, D)
               + _mm_flops(BN, D, MLP) + _mm_flops(BN, MLP, D))
    + _mm_flops(B, BN, D) + _mm_flops(B, D, DR) + _mm_flops(B, DR, D)
    + _mm_flops(B, D, CLS_PAD)
)
_TRANS = DEPTH * (BN * HBN + BN * MLP) + 3 * B * D + B   # softmax exp, gelu exp, sigmoids


# ----------------------------- host glue -------------------------------------
def patchify(x):
    # NCHW -> (B*P, C*PATCH*PATCH), flattened in (C, ph, pw) order to match
    # Conv2d(weight (D, C, PATCH, PATCH)) semantics.
    hp = IMG // PATCH
    x = x.reshape(B, C, hp, PATCH, hp, PATCH)
    x = x.transpose(0, 2, 4, 1, 3, 5)
    return x.reshape(B * P, PD)


def _pad_row(v, w=VEC_W):
    v = jnp.asarray(v, jnp.float32).reshape(1, -1)
    return jnp.pad(v, ((0, 0), (0, w - v.shape[1])))


def init_params(key):
    keys = iter(jax.random.split(key, 64))
    f32 = jnp.float32

    def nrm(shape, scale=0.02):
        return (scale * jax.random.normal(next(keys), shape)).astype(f32)

    # patch embed conv: weight (D, C, PATCH, PATCH), bias (D,)
    w_conv = nrm((D, C, PATCH, PATCH))
    w_patch = w_conv.reshape(D, PD).T.astype(jnp.bfloat16)          # (PD, D) bf16
    b_patch = jnp.zeros((D,), f32)

    cls_token = nrm((1, 1, D))
    pos_embed = nrm((1, N, D))

    # additive slab (BN, D): row b*N = cls + pos[0]; rows b*N+1+p = conv bias + pos[1+p]
    tok_add = jnp.concatenate(
        [cls_token[0] + pos_embed[0, 0:1, :],
         pos_embed[0, 1:, :] + b_patch[None, :]], axis=0).astype(f32)   # (N, D)
    add_slab = jnp.tile(tok_add, (B, 1))                                # (BN, D)

    # one-hot scatter (BN, B*P): patch p of batch b -> token row b*N+1+p
    rows = jnp.arange(BN)
    cols = jnp.arange(B * P)
    scatter = ((rows[:, None] // N == cols[None, :] // P) &
               (rows[:, None] % N == cols[None, :] % P + 1)).astype(f32)

    # one-hot gather (B, BN): cls row of each batch
    gather_cls = (jnp.arange(BN)[None, :] == (jnp.arange(B) * N)[:, None]).astype(f32)

    # packed-attention constants
    rep = jnp.tile(jnp.eye(BN, dtype=f32), (H, 1))                      # (HBN, BN)
    head_of_row = jnp.arange(HBN) // BN
    mask_slab = (head_of_row[:, None] == (jnp.arange(D) // DH)[None, :]).astype(f32)  # (HBN, D)
    ones_bd = (head_of_row[:, None] == head_of_row[None, :]).astype(f32)              # (HBN, HBN)
    # cross-batch additive bias, tiled across the H head blocks
    # NOTE: at large batch this O((BN)^2) trick should be replaced by a
    # parallel batch grid axis (see header comment).
    ri = jnp.arange(BN) // N
    cj = (jnp.arange(HBN) % BN) // N
    bias_packed = jnp.where(ri[:, None] == cj[None, :], 0.0, -1e9).astype(f32)        # (BN, HBN)

    # per-block weights stacked along DEPTH, bf16 for the MXU
    wqkv = jnp.stack([nrm((D, 3 * D)) for _ in range(DEPTH)]).astype(jnp.bfloat16)
    wproj = jnp.stack([nrm((D, D)) for _ in range(DEPTH)]).astype(jnp.bfloat16)
    wfc1 = jnp.stack([nrm((D, MLP)) for _ in range(DEPTH)]).astype(jnp.bfloat16)
    wfc2 = jnp.stack([nrm((MLP, D)) for _ in range(DEPTH)]).astype(jnp.bfloat16)

    # packed per-block vectors: ln1 g/b, b_qkv, b_proj, ln2 g/b, b_fc1, b_fc2
    vec_blocks = []
    for _ in range(DEPTH):
        rows_ = [
            _pad_row(jnp.ones((D,), f32)),        # ln1 gamma
            _pad_row(jnp.zeros((D,), f32)),       # ln1 beta
            _pad_row(jnp.zeros((3 * D,), f32)),   # b_qkv
            _pad_row(jnp.zeros((D,), f32)),       # b_proj
            _pad_row(jnp.ones((D,), f32)),        # ln2 gamma
            _pad_row(jnp.zeros((D,), f32)),       # ln2 beta
            _pad_row(jnp.zeros((MLP,), f32)),     # b_fc1
            _pad_row(jnp.zeros((D,), f32)),       # b_fc2
        ]
        vec_blocks.append(jnp.concatenate(rows_, axis=0))               # (8, 128)
    vec_slab = jnp.stack(vec_blocks)                                    # (DEPTH, 8, 128)

    # head: final norm, CBAM, classifier
    norm_g = jnp.ones((D,), f32)
    norm_b = jnp.zeros((D,), f32)
    w_cbam1 = nrm((D, DR))
    w_cbam2 = nrm((DR, D))
    # TODO(synk): the reference CBAM module config (bias on channel-MLP and on
    # the 7x7 spatial conv) is not given; biases are carried but zero-init, so
    # the result matches the common bias-free CBAM exactly.
    b_cbam1 = jnp.zeros((DR,), f32)
    b_cbam2 = jnp.zeros((D,), f32)
    w_sa_full = nrm((1, 2, 7, 7))                                       # Conv2d(2,1,7,pad=3)
    wsa_center = w_sa_full[0, :, 3, 3]                                  # (2,) center taps
    b_sa = jnp.zeros((1,), f32)
    w_cls = nrm((D, NUM_CLASSES))
    b_cls = jnp.zeros((NUM_CLASSES,), f32)

    head_mats = jnp.stack([
        jnp.pad(w_cls, ((0, 0), (0, CLS_PAD - NUM_CLASSES))),           # (D, 128)
        jnp.pad(w_cbam1, ((0, 0), (0, CLS_PAD - DR))),                  # (D, 128)
    ])                                                                  # (2, D, 128)

    head_rows = [
        _pad_row(norm_g), _pad_row(norm_b),
        _pad_row(jnp.pad(b_cls, (0, CLS_PAD - NUM_CLASSES))),
        _pad_row(jnp.concatenate([wsa_center, b_sa])),                  # [w0, w1, b_sa]
    ]
    head_rows += [_pad_row(w_cbam2[i]) for i in range(DR)]
    head_rows += [_pad_row(b_cbam2), _pad_row(b_cbam1)]
    assert len(head_rows) <= 8
    head_rows += [_pad_row(jnp.zeros((VEC_W,), f32))] * (8 - len(head_rows))
    head_vec = jnp.concatenate(head_rows, axis=0)                       # (8, 128)

    return dict(w_patch=w_patch, scatter=scatter, add_slab=add_slab,
                bias_packed=bias_packed, rep=rep, mask_slab=mask_slab,
                ones_bd=ones_bd, wqkv=wqkv, wproj=wproj, wfc1=wfc1, wfc2=wfc2,
                vec_slab=vec_slab, gather_cls=gather_cls,
                head_mats=head_mats, head_vec=head_vec)


@jax.jit
def vit_cbam_forward(x, params):
    patches = patchify(x)                                               # (B*P, PD)
    args = (patches, params['w_patch'], params['scatter'], params['add_slab'],
            params['bias_packed'], params['rep'], params['mask_slab'],
            params['ones_bd'], params['wqkv'], params['wproj'], params['wfc1'],
            params['wfc2'], params['vec_slab'], params['gather_cls'],
            params['head_mats'], params['head_vec'])

    bytes_accessed = (sum(int(a.size) * int(jnp.dtype(a.dtype).itemsize) for a in args)
                      + B * CLS_PAD * 4)

    out_pad = pl.pallas_call(
        fused_vit_cbam_kernel,
        out_shape=jax.ShapeDtypeStruct((B, CLS_PAD), jnp.float32),
        in_specs=[pl.BlockSpec(memory_space=pltpu.MemorySpace.VMEM)
                  for _ in range(len(args))],
        out_specs=pl.BlockSpec(memory_space=pltpu.MemorySpace.VMEM),
        cost_estimate=pl.CostEstimate(flops=_FLOPS, transcendentals=_TRANS,
                                      bytes_accessed=bytes_accessed),
    )(*args)
    return out_pad[:, :NUM_CLASSES]


if __name__ == "__main__":
    key = jax.random.PRNGKey(0)
    k_x, k_p = jax.random.split(key)
    x = jax.random.normal(k_x, (B, C, IMG, IMG), dtype=jnp.float32)     # NCHW
    params = init_params(k_p)

    logits = vit_cbam_forward(x, params)
    jax.block_until_ready(logits)
    assert logits.shape == (B, NUM_CLASSES)
    print("KERNEL_OK")
</pallas_src>

<mosaic_0001>
module attributes {stable_mosaic.version = 11 : i64} {
  func.func @fused_vit_cbam_kernel(%arg0: memref<8x768xf32, #tpu.memory_space<vmem>>, %arg1: memref<768x32xbf16, #tpu.memory_space<vmem>>, %arg2: memref<10x8xf32, #tpu.memory_space<vmem>>, %arg3: memref<10x32xf32, #tpu.memory_space<vmem>>, %arg4: memref<10x40xf32, #tpu.memory_space<vmem>>, %arg5: memref<40x10xf32, #tpu.memory_space<vmem>>, %arg6: memref<40x32xf32, #tpu.memory_space<vmem>>, %arg7: memref<40x40xf32, #tpu.memory_space<vmem>>, %arg8: memref<2x32x96xbf16, #tpu.memory_space<vmem>>, %arg9: memref<2x32x32xbf16, #tpu.memory_space<vmem>>, %arg10: memref<2x32x128xbf16, #tpu.memory_space<vmem>>, %arg11: memref<2x128x32xbf16, #tpu.memory_space<vmem>>, %arg12: memref<2x8x128xf32, #tpu.memory_space<vmem>>, %arg13: memref<2x10xf32, #tpu.memory_space<vmem>>, %arg14: memref<2x32x128xf32, #tpu.memory_space<vmem>>, %arg15: memref<8x128xf32, #tpu.memory_space<vmem>>, %arg16: memref<2x128xf32, #tpu.memory_space<vmem>>) attributes {dimension_semantics = [], scalar_prefetch = 0 : i64, scratch_operands = 0 : i64, tpu.core_type = #tpu.core_type<tc>} {
    %c0 = arith.constant 0 : index
    %c0_0 = arith.constant 0 : index
    %0 = vector.load %arg0[%c0, %c0_0] : memref<8x768xf32, #tpu.memory_space<vmem>>, vector<8x768xf32>
    %1 = arith.truncf %0 : vector<8x768xf32> to vector<8x768xbf16>
    %c0_1 = arith.constant 0 : index
    %c0_2 = arith.constant 0 : index
    %2 = vector.load %arg1[%c0_1, %c0_2] : memref<768x32xbf16, #tpu.memory_space<vmem>>, vector<768x32xbf16>
    %cst = arith.constant dense<0.000000e+00> : vector<8x32xf32>
    %3 = tpu.matmul %1, %2, %cst {dimension_numbers = #tpu.dot_dimension_numbers<[1], [0], [0], [1], [0, 0, 1, 1], [], []>} : vector<8x768xbf16>, vector<768x32xbf16>, vector<8x32xf32> -> vector<8x32xf32>
    %c0_3 = arith.constant 0 : index
    %c0_4 = arith.constant 0 : index
    %4 = vector.load %arg2[%c0_3, %c0_4] : memref<10x8xf32, #tpu.memory_space<vmem>>, vector<10x8xf32>
    %cst_5 = arith.constant dense<0.000000e+00> : vector<10x32xf32>
    %5 = tpu.matmul %4, %3, %cst_5 {dimension_numbers = #tpu.dot_dimension_numbers<[1], [0], [0], [1], [0, 0, 1, 1], [], []>} : vector<10x8xf32>, vector<8x32xf32>, vector<10x32xf32> -> vector<10x32xf32>
    %c0_6 = arith.constant 0 : index
    %c0_7 = arith.constant 0 : index
    %6 = vector.load %arg3[%c0_6, %c0_7] : memref<10x32xf32, #tpu.memory_space<vmem>>, vector<10x32xf32>
    %7 = arith.addf %5, %6 : vector<10x32xf32>
    %c0_8 = arith.constant 0 : index
    %c0_9 = arith.constant 0 : index
    %8 = vector.load %arg5[%c0_8, %c0_9] : memref<40x10xf32, #tpu.memory_space<vmem>>, vector<40x10xf32>
    %c0_10 = arith.constant 0 : index
    %c0_11 = arith.constant 0 : index
    %9 = vector.load %arg6[%c0_10, %c0_11] : memref<40x32xf32, #tpu.memory_space<vmem>>, vector<40x32xf32>
    %c0_12 = arith.constant 0 : index
    %c0_13 = arith.constant 0 : index
    %10 = vector.load %arg7[%c0_12, %c0_13] : memref<40x40xf32, #tpu.memory_space<vmem>>, vector<40x40xf32>
    %c0_14 = arith.constant 0 : index
    %c0_15 = arith.constant 0 : index
    %11 = vector.load %arg4[%c0_14, %c0_15] : memref<10x40xf32, #tpu.memory_space<vmem>>, vector<10x40xf32>
    %c0_16 = arith.constant 0 : index
    %c0_17 = arith.constant 0 : index
    %c0_18 = arith.constant 0 : index
    %12 = vector.load %arg12[%c0_16, %c0_17, %c0_18] : memref<2x8x128xf32, #tpu.memory_space<vmem>>, vector<1x8x128xf32>
    %13 = vector.shape_cast %12 : vector<1x8x128xf32> to vector<8x128xf32>
    %14 = vector.extract_strided_slice %13 {offsets = [0, 0], sizes = [1, 32], strides = [1, 1]} : vector<8x128xf32> to vector<1x32xf32>
    %15 = vector.extract_strided_slice %13 {offsets = [1, 0], sizes = [1, 32], strides = [1, 1]} : vector<8x128xf32> to vector<1x32xf32>
    %16 = vector.extract_strided_slice %13 {offsets = [2, 0], sizes = [1, 96], strides = [1, 1]} : vector<8x128xf32> to vector<1x96xf32>
    %17 = vector.extract_strided_slice %13 {offsets = [3, 0], sizes = [1, 32], strides = [1, 1]} : vector<8x128xf32> to vector<1x32xf32>
    %18 = vector.extract_strided_slice %13 {offsets = [4, 0], sizes = [1, 32], strides = [1, 1]} : vector<8x128xf32> to vector<1x32xf32>
    %19 = vector.extract_strided_slice %13 {offsets = [5, 0], sizes = [1, 32], strides = [1, 1]} : vector<8x128xf32> to vector<1x32xf32>
    %20 = vector.extract_strided_slice %13 {offsets = [6, 0], sizes = [1, 128], strides = [1, 1]} : vector<8x128xf32> to vector<1x128xf32>
    %21 = vector.extract_strided_slice %13 {offsets = [7, 0], sizes = [1, 32], strides = [1, 1]} : vector<8x128xf32> to vector<1x32xf32>
    %cst_19 = arith.constant dense<0.000000e+00> : vector<10xf32>
    %22 = vector.multi_reduction <add>, %7, %cst_19 [1] : vector<10x32xf32> to vector<10xf32>
    %23 = vector.shape_cast %22 : vector<10xf32> to vector<10x1xf32>
    %cst_20 = arith.constant 3.200000e+01 : f32
    %24 = vector.broadcast %cst_20 : f32 to vector<10x1xf32>
    %25 = arith.divf %23, %24 : vector<10x1xf32>
    %26 = vector.broadcast %25 : vector<10x1xf32> to vector<10x32xf32>
    %27 = arith.subf %7, %26 : vector<10x32xf32>
    %28 = arith.mulf %27, %27 : vector<10x32xf32>
    %cst_21 = arith.constant dense<0.000000e+00> : vector<10xf32>
    %29 = vector.multi_reduction <add>, %28, %cst_21 [1] : vector<10x32xf32> to vector<10xf32>
    %30 = vector.shape_cast %29 : vector<10xf32> to vector<10x1xf32>
    %cst_22 = arith.constant 3.200000e+01 : f32
    %31 = vector.broadcast %cst_22 : f32 to vector<10x1xf32>
    %32 = arith.divf %30, %31 : vector<10x1xf32>
    %33 = vector.broadcast %25 : vector<10x1xf32> to vector<10x32xf32>
    %34 = arith.subf %7, %33 : vector<10x32xf32>
    %cst_23 = arith.constant 9.99999997E-7 : f32
    %35 = vector.broadcast %cst_23 : f32 to vector<10x1xf32>
    %36 = arith.addf %32, %35 : vector<10x1xf32>
    %37 = math.rsqrt %36 : vector<10x1xf32>
    %38 = vector.broadcast %37 : vector<10x1xf32> to vector<10x32xf32>
    %39 = arith.mulf %34, %38 : vector<10x32xf32>
    %40 = vector.broadcast %14 : vector<1x32xf32> to vector<10x32xf32>
    %41 = arith.mulf %39, %40 : vector<10x32xf32>
    %42 = vector.broadcast %15 : vector<1x32xf32> to vector<10x32xf32>
    %43 = arith.addf %41, %42 : vector<10x32xf32>
    %44 = arith.truncf %43 : vector<10x32xf32> to vector<10x32xbf16>
    %c0_24 = arith.constant 0 : index
    %c0_25 = arith.constant 0 : index
    %c0_26 = arith.constant 0 : index
    %45 = vector.load %arg8[%c0_24, %c0_25, %c0_26] : memref<2x32x96xbf16, #tpu.memory_space<vmem>>, vector<1x32x96xbf16>
    %46 = vector.shape_cast %45 : vector<1x32x96xbf16> to vector<32x96xbf16>
    %cst_27 = arith.constant dense<0.000000e+00> : vector<10x96xf32>
    %47 = tpu.matmul %44, %46, %cst_27 {dimension_numbers = #tpu.dot_dimension_numbers<[1], [0], [0], [1], [0, 0, 1, 1], [], []>} : vector<10x32xbf16>, vector<32x96xbf16>, vector<10x96xf32> -> vector<10x96xf32>
    %48 = vector.broadcast %16 : vector<1x96xf32> to vector<10x96xf32>
    %49 = arith.addf %47, %48 : vector<10x96xf32>
    %50 = vector.extract_strided_slice %49 {offsets = [0, 0], sizes = [10, 32], strides = [1, 1]} : vector<10x96xf32> to vector<10x32xf32>
    %cst_28 = arith.constant 0.353553385 : f32
    %51 = vector.broadcast %cst_28 : f32 to vector<10x32xf32>
    %52 = arith.mulf %50, %51 : vector<10x32xf32>
    %53 = vector.extract_strided_slice %49 {offsets = [0, 32], sizes = [10, 32], strides = [1, 1]} : vector<10x96xf32> to vector<10x32xf32>
    %54 = vector.extract_strided_slice %49 {offsets = [0, 64], sizes = [10, 32], strides = [1, 1]} : vector<10x96xf32> to vector<10x32xf32>
    %cst_29 = arith.constant dense<0.000000e+00> : vector<40x32xf32>
    %55 = tpu.matmul %8, %53, %cst_29 {dimension_numbers = #tpu.dot_dimension_numbers<[1], [0], [0], [1], [0, 0, 1, 1], [], []>} : vector<40x10xf32>, vector<10x32xf32>, vector<40x32xf32> -> vector<40x32xf32>
    %56 = arith.mulf %55, %9 : vector<40x32xf32>
    %cst_30 = arith.constant dense<0.000000e+00> : vector<40x32xf32>
    %57 = tpu.matmul %8, %54, %cst_30 {dimension_numbers = #tpu.dot_dimension_numbers<[1], [0], [0], [1], [0, 0, 1, 1], [], []>} : vector<40x10xf32>, vector<10x32xf32>, vector<40x32xf32> -> vector<40x32xf32>
    %58 = arith.mulf %57, %9 : vector<40x32xf32>
    %cst_31 = arith.constant dense<0.000000e+00> : vector<10x40xf32>
    %59 = tpu.matmul %52, %56, %cst_31 {dimension_numbers = #tpu.dot_dimension_numbers<[1], [1], [0], [0], [0, 0, 1, 0], [], []>} : vector<10x32xf32>, vector<40x32xf32>, vector<10x40xf32> -> vector<10x40xf32>
    %60 = arith.addf %59, %11 : vector<10x40xf32>
    %cst_32 = arith.constant dense<0xFF800000> : vector<10xf32>
    %61 = vector.multi_reduction <maximumf>, %60, %cst_32 [1] : vector<10x40xf32> to vector<10xf32>
    %62 = vector.shape_cast %61 : vector<10xf32> to vector<10x1xf32>
    %63 = vector.broadcast %62 : vector<10x1xf32> to vector<10x40xf32>
    %64 = arith.subf %60, %63 : vector<10x40xf32>
    %65 = math.exp %64 : vector<10x40xf32>
    %cst_33 = arith.constant dense<0.000000e+00> : vector<10x40xf32>
    %66 = tpu.matmul %65, %10, %cst_33 {dimension_numbers = #tpu.dot_dimension_numbers<[1], [0], [0], [1], [0, 0, 1, 1], [], []>} : vector<10x40xf32>, vector<40x40xf32>, vector<10x40xf32> -> vector<10x40xf32>
    %67 = arith.divf %65, %66 : vector<10x40xf32>
    %cst_34 = arith.constant dense<0.000000e+00> : vector<10x32xf32>
    %68 = tpu.matmul %67, %58, %cst_34 {dimension_numbers = #tpu.dot_dimension_numbers<[1], [0], [0], [1], [0, 0, 1, 1], [], []>} : vector<10x40xf32>, vector<40x32xf32>, vector<10x32xf32> -> vector<10x32xf32>
    %69 = arith.truncf %68 : vector<10x32xf32> to vector<10x32xbf16>
    %c0_35 = arith.constant 0 : index
    %c0_36 = arith.constant 0 : index
    %c0_37 = arith.constant 0 : index
    %70 = vector.load %arg9[%c0_35, %c0_36, %c0_37] : memref<2x32x32xbf16, #tpu.memory_space<vmem>>, vector<1x32x32xbf16>
    %71 = vector.shape_cast %70 : vector<1x32x32xbf16> to vector<32x32xbf16>
    %cst_38 = arith.constant dense<0.000000e+00> : vector<10x32xf32>
    %72 = tpu.matmul %69, %71, %cst_38 {dimension_numbers = #tpu.dot_dimension_numbers<[1], [0], [0], [1], [0, 0, 1, 1], [], []>} : vector<10x32xbf16>, vector<32x32xbf16>, vector<10x32xf32> -> vector<10x32xf32>
    %73 = vector.broadcast %17 : vector<1x32xf32> to vector<10x32xf32>
    %74 = arith.addf %72, %73 : vector<10x32xf32>
    %75 = arith.addf %7, %74 : vector<10x32xf32>
    %cst_39 = arith.constant dense<0.000000e+00> : vector<10xf32>
    %76 = vector.multi_reduction <add>, %75, %cst_39 [1] : vector<10x32xf32> to vector<10xf32>
    %77 = vector.shape_cast %76 : vector<10xf32> to vector<10x1xf32>
    %cst_40 = arith.constant 3.200000e+01 : f32
    %78 = vector.broadcast %cst_40 : f32 to vector<10x1xf32>
    %79 = arith.divf %77, %78 : vector<10x1xf32>
    %80 = vector.broadcast %79 : vector<10x1xf32> to vector<10x32xf32>
    %81 = arith.subf %75, %80 : vector<10x32xf32>
    %82 = arith.mulf %81, %81 : vector<10x32xf32>
    %cst_41 = arith.constant dense<0.000000e+00> : vector<10xf32>
    %83 = vector.multi_reduction <add>, %82, %cst_41 [1] : vector<10x32xf32> to vector<10xf32>
    %84 = vector.shape_cast %83 : vector<10xf32> to vector<10x1xf32>
    %cst_42 = arith.constant 3.200000e+01 : f32
    %85 = vector.broadcast %cst_42 : f32 to vector<10x1xf32>
    %86 = arith.divf %84, %85 : vector<10x1xf32>
    %87 = vector.broadcast %79 : vector<10x1xf32> to vector<10x32xf32>
    %88 = arith.subf %75, %87 : vector<10x32xf32>
    %cst_43 = arith.constant 9.99999997E-7 : f32
    %89 = vector.broadcast %cst_43 : f32 to vector<10x1xf32>
    %90 = arith.addf %86, %89 : vector<10x1xf32>
    %91 = math.rsqrt %90 : vector<10x1xf32>
    %92 = vector.broadcast %91 : vector<10x1xf32> to vector<10x32xf32>
    %93 = arith.mulf %88, %92 : vector<10x32xf32>
    %94 = vector.broadcast %18 : vector<1x32xf32> to vector<10x32xf32>
    %95 = arith.mulf %93, %94 : vector<10x32xf32>
    %96 = vector.broadcast %19 : vector<1x32xf32> to vector<10x32xf32>
    %97 = arith.addf %95, %96 : vector<10x32xf32>
    %98 = arith.truncf %97 : vector<10x32xf32> to vector<10x32xbf16>
    %c0_44 = arith.constant 0 : index
    %c0_45 = arith.constant 0 : index
    %c0_46 = arith.constant 0 : index
    %99 = vector.load %arg10[%c0_44, %c0_45, %c0_46] : memref<2x32x128xbf16, #tpu.memory_space<vmem>>, vector<1x32x128xbf16>
    %100 = vector.shape_cast %99 : vector<1x32x128xbf16> to vector<32x128xbf16>
    %cst_47 = arith.constant dense<0.000000e+00> : vector<10x128xf32>
    %101 = tpu.matmul %98, %100, %cst_47 {dimension_numbers = #tpu.dot_dimension_numbers<[1], [0], [0], [1], [0, 0, 1, 1], [], []>} : vector<10x32xbf16>, vector<32x128xbf16>, vector<10x128xf32> -> vector<10x128xf32>
    %102 = vector.broadcast %20 : vector<1x128xf32> to vector<10x128xf32>
    %103 = arith.addf %101, %102 : vector<10x128xf32>
    %cst_48 = arith.constant 5.000000e-01 : f32
    %104 = vector.broadcast %cst_48 : f32 to vector<10x128xf32>
    %105 = arith.mulf %104, %103 : vector<10x128xf32>
    %cst_49 = arith.constant 0.707106769 : f32
    %106 = vector.broadcast %cst_49 : f32 to vector<10x128xf32>
    %107 = arith.mulf %103, %106 : vector<10x128xf32>
    %cst_50 = arith.constant 0.000000e+00 : f32
    %108 = vector.broadcast %cst_50 : f32 to vector<10x128xf32>
    %109 = arith.cmpf oge, %107, %108 : vector<10x128xf32>
    %cst_51 = arith.constant 1.000000e+00 : f32
    %cst_52 = arith.constant -1.000000e+00 : f32
    %110 = vector.broadcast %cst_51 : f32 to vector<10x128xf32>
    %111 = vector.broadcast %cst_52 : f32 to vector<10x128xf32>
    %112 = arith.select %109, %110, %111 : vector<10x128xi1>, vector<10x128xf32>
    %113 = math.absf %107 : vector<10x128xf32>
    %cst_53 = arith.constant 0.327591091 : f32
    %114 = vector.broadcast %cst_53 : f32 to vector<10x128xf32>
    %115 = arith.mulf %114, %113 : vector<10x128xf32>
    %cst_54 = arith.constant 1.000000e+00 : f32
    %116 = vector.broadcast %cst_54 : f32 to vector<10x128xf32>
    %117 = arith.addf %116, %115 : vector<10x128xf32>
    %cst_55 = arith.constant 1.000000e+00 : f32
    %118 = vector.broadcast %cst_55 : f32 to vector<10x128xf32>
    %119 = arith.divf %118, %117 : vector<10x128xf32>
    %cst_56 = arith.constant 1.06140542 : f32
    %120 = vector.broadcast %cst_56 : f32 to vector<10x128xf32>
    %121 = arith.mulf %119, %120 : vector<10x128xf32>
    %cst_57 = arith.constant -1.45315206 : f32
    %122 = vector.broadcast %cst_57 : f32 to vector<10x128xf32>
    %123 = arith.addf %122, %121 : vector<10x128xf32>
    %124 = arith.mulf %119, %123 : vector<10x128xf32>
    %cst_58 = arith.constant 1.42141378 : f32
    %125 = vector.broadcast %cst_58 : f32 to vector<10x128xf32>
    %126 = arith.addf %125, %124 : vector<10x128xf32>
    %127 = arith.mulf %119, %126 : vector<10x128xf32>
    %cst_59 = arith.constant -0.284496725 : f32
    %128 = vector.broadcast %cst_59 : f32 to vector<10x128xf32>
    %129 = arith.addf %128, %127 : vector<10x128xf32>
    %130 = arith.mulf %119, %129 : vector<10x128xf32>
    %cst_60 = arith.constant 0.254829586 : f32
    %131 = vector.broadcast %cst_60 : f32 to vector<10x128xf32>
    %132 = arith.addf %131, %130 : vector<10x128xf32>
    %133 = arith.mulf %119, %132 : vector<10x128xf32>
    %cst_61 = arith.constant 0.000000e+00 : f32
    %134 = vector.broadcast %cst_61 : f32 to vector<10x128xf32>
    %135 = arith.subf %134, %113 : vector<10x128xf32>
    %136 = arith.mulf %135, %113 : vector<10x128xf32>
    %137 = math.exp %136 : vector<10x128xf32>
    %138 = arith.mulf %133, %137 : vector<10x128xf32>
    %cst_62 = arith.constant 1.000000e+00 : f32
    %139 = vector.broadcast %cst_62 : f32 to vector<10x128xf32>
    %140 = arith.subf %139, %138 : vector<10x128xf32>
    %141 = arith.mulf %112, %140 : vector<10x128xf32>
    %cst_63 = arith.constant 1.000000e+00 : f32
    %142 = vector.broadcast %cst_63 : f32 to vector<10x128xf32>
    %143 = arith.addf %142, %141 : vector<10x128xf32>
    %144 = arith.mulf %105, %143 : vector<10x128xf32>
    %145 = arith.truncf %144 : vector<10x128xf32> to vector<10x128xbf16>
    %c0_64 = arith.constant 0 : index
    %c0_65 = arith.constant 0 : index
    %c0_66 = arith.constant 0 : index
    %146 = vector.load %arg11[%c0_64, %c0_65, %c0_66] : memref<2x128x32xbf16, #tpu.memory_space<vmem>>, vector<1x128x32xbf16>
    %147 = vector.shape_cast %146 : vector<1x128x32xbf16> to vector<128x32xbf16>
    %cst_67 = arith.constant dense<0.000000e+00> : vector<10x32xf32>
    %148 = tpu.matmul %145, %147, %cst_67 {dimension_numbers = #tpu.dot_dimension_numbers<[1], [0], [0], [1], [0, 0, 1, 1], [], []>} : vector<10x128xbf16>, vector<128x32xbf16>, vector<10x32xf32> -> vector<10x32xf32>
    %149 = vector.broadcast %21 : vector<1x32xf32> to vector<10x32xf32>
    %150 = arith.addf %148, %149 : vector<10x32xf32>
    %151 = arith.addf %75, %150 : vector<10x32xf32>
    %c1 = arith.constant 1 : index
    %c0_68 = arith.constant 0 : index
    %c0_69 = arith.constant 0 : index
    %152 = vector.load %arg12[%c1, %c0_68, %c0_69] : memref<2x8x128xf32, #tpu.memory_space<vmem>>, vector<1x8x128xf32>
    %153 = vector.shape_cast %152 : vector<1x8x128xf32> to vector<8x128xf32>
    %154 = vector.extract_strided_slice %153 {offsets = [0, 0], sizes = [1, 32], strides = [1, 1]} : vector<8x128xf32> to vector<1x32xf32>
    %155 = vector.extract_strided_slice %153 {offsets = [1, 0], sizes = [1, 32], strides = [1, 1]} : vector<8x128xf32> to vector<1x32xf32>
    %156 = vector.extract_strided_slice %153 {offsets = [2, 0], sizes = [1, 96], strides = [1, 1]} : vector<8x128xf32> to vector<1x96xf32>
    %157 = vector.extract_strided_slice %153 {offsets = [3, 0], sizes = [1, 32], strides = [1, 1]} : vector<8x128xf32> to vector<1x32xf32>
    %158 = vector.extract_strided_slice %153 {offsets = [4, 0], sizes = [1, 32], strides = [1, 1]} : vector<8x128xf32> to vector<1x32xf32>
    %159 = vector.extract_strided_slice %153 {offsets = [5, 0], sizes = [1, 32], strides = [1, 1]} : vector<8x128xf32> to vector<1x32xf32>
    %160 = vector.extract_strided_slice %153 {offsets = [6, 0], sizes = [1, 128], strides = [1, 1]} : vector<8x128xf32> to vector<1x128xf32>
    %161 = vector.extract_strided_slice %153 {offsets = [7, 0], sizes = [1, 32], strides = [1, 1]} : vector<8x128xf32> to vector<1x32xf32>
    %cst_70 = arith.constant dense<0.000000e+00> : vector<10xf32>
    %162 = vector.multi_reduction <add>, %151, %cst_70 [1] : vector<10x32xf32> to vector<10xf32>
    %163 = vector.shape_cast %162 : vector<10xf32> to vector<10x1xf32>
    %cst_71 = arith.constant 3.200000e+01 : f32
    %164 = vector.broadcast %cst_71 : f32 to vector<10x1xf32>
    %165 = arith.divf %163, %164 : vector<10x1xf32>
    %166 = vector.broadcast %165 : vector<10x1xf32> to vector<10x32xf32>
    %167 = arith.subf %151, %166 : vector<10x32xf32>
    %168 = arith.mulf %167, %167 : vector<10x32xf32>
    %cst_72 = arith.constant dense<0.000000e+00> : vector<10xf32>
    %169 = vector.multi_reduction <add>, %168, %cst_72 [1] : vector<10x32xf32> to vector<10xf32>
    %170 = vector.shape_cast %169 : vector<10xf32> to vector<10x1xf32>
    %cst_73 = arith.constant 3.200000e+01 : f32
    %171 = vector.broadcast %cst_73 : f32 to vector<10x1xf32>
    %172 = arith.divf %170, %171 : vector<10x1xf32>
    %173 = vector.broadcast %165 : vector<10x1xf32> to vector<10x32xf32>
    %174 = arith.subf %151, %173 : vector<10x32xf32>
    %cst_74 = arith.constant 9.99999997E-7 : f32
    %175 = vector.broadcast %cst_74 : f32 to vector<10x1xf32>
    %176 = arith.addf %172, %175 : vector<10x1xf32>
    %177 = math.rsqrt %176 : vector<10x1xf32>
    %178 = vector.broadcast %177 : vector<10x1xf32> to vector<10x32xf32>
    %179 = arith.mulf %174, %178 : vector<10x32xf32>
    %180 = vector.broadcast %154 : vector<1x32xf32> to vector<10x32xf32>
    %181 = arith.mulf %179, %180 : vector<10x32xf32>
    %182 = vector.broadcast %155 : vector<1x32xf32> to vector<10x32xf32>
    %183 = arith.addf %181, %182 : vector<10x32xf32>
    %184 = arith.truncf %183 : vector<10x32xf32> to vector<10x32xbf16>
    %c1_75 = arith.constant 1 : index
    %c0_76 = arith.constant 0 : index
    %c0_77 = arith.constant 0 : index
    %185 = vector.load %arg8[%c1_75, %c0_76, %c0_77] : memref<2x32x96xbf16, #tpu.memory_space<vmem>>, vector<1x32x96xbf16>
    %186 = vector.shape_cast %185 : vector<1x32x96xbf16> to vector<32x96xbf16>
    %cst_78 = arith.constant dense<0.000000e+00> : vector<10x96xf32>
    %187 = tpu.matmul %184, %186, %cst_78 {dimension_numbers = #tpu.dot_dimension_numbers<[1], [0], [0], [1], [0, 0, 1, 1], [], []>} : vector<10x32xbf16>, vector<32x96xbf16>, vector<10x96xf32> -> vector<10x96xf32>
    %188 = vector.broadcast %156 : vector<1x96xf32> to vector<10x96xf32>
    %189 = arith.addf %187, %188 : vector<10x96xf32>
    %190 = vector.extract_strided_slice %189 {offsets = [0, 0], sizes = [10, 32], strides = [1, 1]} : vector<10x96xf32> to vector<10x32xf32>
    %cst_79 = arith.constant 0.353553385 : f32
    %191 = vector.broadcast %cst_79 : f32 to vector<10x32xf32>
    %192 = arith.mulf %190, %191 : vector<10x32xf32>
    %193 = vector.extract_strided_slice %189 {offsets = [0, 32], sizes = [10, 32], strides = [1, 1]} : vector<10x96xf32> to vector<10x32xf32>
    %194 = vector.extract_strided_slice %189 {offsets = [0, 64], sizes = [10, 32], strides = [1, 1]} : vector<10x96xf32> to vector<10x32xf32>
    %cst_80 = arith.constant dense<0.000000e+00> : vector<40x32xf32>
    %195 = tpu.matmul %8, %193, %cst_80 {dimension_numbers = #tpu.dot_dimension_numbers<[1], [0], [0], [1], [0, 0, 1, 1], [], []>} : vector<40x10xf32>, vector<10x32xf32>, vector<40x32xf32> -> vector<40x32xf32>
    %196 = arith.mulf %195, %9 : vector<40x32xf32>
    %cst_81 = arith.constant dense<0.000000e+00> : vector<40x32xf32>
    %197 = tpu.matmul %8, %194, %cst_81 {dimension_numbers = #tpu.dot_dimension_numbers<[1], [0], [0], [1], [0, 0, 1, 1], [], []>} : vector<40x10xf32>, vector<10x32xf32>, vector<40x32xf32> -> vector<40x32xf32>
    %198 = arith.mulf %197, %9 : vector<40x32xf32>
    %cst_82 = arith.constant dense<0.000000e+00> : vector<10x40xf32>
    %199 = tpu.matmul %192, %196, %cst_82 {dimension_numbers = #tpu.dot_dimension_numbers<[1], [1], [0], [0], [0, 0, 1, 0], [], []>} : vector<10x32xf32>, vector<40x32xf32>, vector<10x40xf32> -> vector<10x40xf32>
    %200 = arith.addf %199, %11 : vector<10x40xf32>
    %cst_83 = arith.constant dense<0xFF800000> : vector<10xf32>
    %201 = vector.multi_reduction <maximumf>, %200, %cst_83 [1] : vector<10x40xf32> to vector<10xf32>
    %202 = vector.shape_cast %201 : vector<10xf32> to vector<10x1xf32>
    %203 = vector.broadcast %202 : vector<10x1xf32> to vector<10x40xf32>
    %204 = arith.subf %200, %203 : vector<10x40xf32>
    %205 = math.exp %204 : vector<10x40xf32>
    %cst_84 = arith.constant dense<0.000000e+00> : vector<10x40xf32>
    %206 = tpu.matmul %205, %10, %cst_84 {dimension_numbers = #tpu.dot_dimension_numbers<[1], [0], [0], [1], [0, 0, 1, 1], [], []>} : vector<10x40xf32>, vector<40x40xf32>, vector<10x40xf32> -> vector<10x40xf32>
    %207 = arith.divf %205, %206 : vector<10x40xf32>
    %cst_85 = arith.constant dense<0.000000e+00> : vector<10x32xf32>
    %208 = tpu.matmul %207, %198, %cst_85 {dimension_numbers = #tpu.dot_dimension_numbers<[1], [0], [0], [1], [0, 0, 1, 1], [], []>} : vector<10x40xf32>, vector<40x32xf32>, vector<10x32xf32> -> vector<10x32xf32>
    %209 = arith.truncf %208 : vector<10x32xf32> to vector<10x32xbf16>
    %c1_86 = arith.constant 1 : index
    %c0_87 = arith.constant 0 : index
    %c0_88 = arith.constant 0 : index
    %210 = vector.load %arg9[%c1_86, %c0_87, %c0_88] : memref<2x32x32xbf16, #tpu.memory_space<vmem>>, vector<1x32x32xbf16>
    %211 = vector.shape_cast %210 : vector<1x32x32xbf16> to vector<32x32xbf16>
    %cst_89 = arith.constant dense<0.000000e+00> : vector<10x32xf32>
    %212 = tpu.matmul %209, %211, %cst_89 {dimension_numbers = #tpu.dot_dimension_numbers<[1], [0], [0], [1], [0, 0, 1, 1], [], []>} : vector<10x32xbf16>, vector<32x32xbf16>, vector<10x32xf32> -> vector<10x32xf32>
    %213 = vector.broadcast %157 : vector<1x32xf32> to vector<10x32xf32>
    %214 = arith.addf %212, %213 : vector<10x32xf32>
    %215 = arith.addf %151, %214 : vector<10x32xf32>
    %cst_90 = arith.constant dense<0.000000e+00> : vector<10xf32>
    %216 = vector.multi_reduction <add>, %215, %cst_90 [1] : vector<10x32xf32> to vector<10xf32>
    %217 = vector.shape_cast %216 : vector<10xf32> to vector<10x1xf32>
    %cst_91 = arith.constant 3.200000e+01 : f32
    %218 = vector.broadcast %cst_91 : f32 to vector<10x1xf32>
    %219 = arith.divf %217, %218 : vector<10x1xf32>
    %220 = vector.broadcast %219 : vector<10x1xf32> to vector<10x32xf32>
    %221 = arith.subf %215, %220 : vector<10x32xf32>
    %222 = arith.mulf %221, %221 : vector<10x32xf32>
    %cst_92 = arith.constant dense<0.000000e+00> : vector<10xf32>
    %223 = vector.multi_reduction <add>, %222, %cst_92 [1] : vector<10x32xf32> to vector<10xf32>
    %224 = vector.shape_cast %223 : vector<10xf32> to vector<10x1xf32>
    %cst_93 = arith.constant 3.200000e+01 : f32
    %225 = vector.broadcast %cst_93 : f32 to vector<10x1xf32>
    %226 = arith.divf %224, %225 : vector<10x1xf32>
    %227 = vector.broadcast %219 : vector<10x1xf32> to vector<10x32xf32>
    %228 = arith.subf %215, %227 : vector<10x32xf32>
    %cst_94 = arith.constant 9.99999997E-7 : f32
    %229 = vector.broadcast %cst_94 : f32 to vector<10x1xf32>
    %230 = arith.addf %226, %229 : vector<10x1xf32>
    %231 = math.rsqrt %230 : vector<10x1xf32>
    %232 = vector.broadcast %231 : vector<10x1xf32> to vector<10x32xf32>
    %233 = arith.mulf %228, %232 : vector<10x32xf32>
    %234 = vector.broadcast %158 : vector<1x32xf32> to vector<10x32xf32>
    %235 = arith.mulf %233, %234 : vector<10x32xf32>
    %236 = vector.broadcast %159 : vector<1x32xf32> to vector<10x32xf32>
    %237 = arith.addf %235, %236 : vector<10x32xf32>
    %238 = arith.truncf %237 : vector<10x32xf32> to vector<10x32xbf16>
    %c1_95 = arith.constant 1 : index
    %c0_96 = arith.constant 0 : index
    %c0_97 = arith.constant 0 : index
    %239 = vector.load %arg10[%c1_95, %c0_96, %c0_97] : memref<2x32x128xbf16, #tpu.memory_space<vmem>>, vector<1x32x128xbf16>
    %240 = vector.shape_cast %239 : vector<1x32x128xbf16> to vector<32x128xbf16>
    %cst_98 = arith.constant dense<0.000000e+00> : vector<10x128xf32>
    %241 = tpu.matmul %238, %240, %cst_98 {dimension_numbers = #tpu.dot_dimension_numbers<[1], [0], [0], [1], [0, 0, 1, 1], [], []>} : vector<10x32xbf16>, vector<32x128xbf16>, vector<10x128xf32> -> vector<10x128xf32>
    %242 = vector.broadcast %160 : vector<1x128xf32> to vector<10x128xf32>
    %243 = arith.addf %241, %242 : vector<10x128xf32>
    %cst_99 = arith.constant 5.000000e-01 : f32
    %244 = vector.broadcast %cst_99 : f32 to vector<10x128xf32>
    %245 = arith.mulf %244, %243 : vector<10x128xf32>
    %cst_100 = arith.constant 0.707106769 : f32
    %246 = vector.broadcast %cst_100 : f32 to vector<10x128xf32>
    %247 = arith.mulf %243, %246 : vector<10x128xf32>
    %cst_101 = arith.constant 0.000000e+00 : f32
    %248 = vector.broadcast %cst_101 : f32 to vector<10x128xf32>
    %249 = arith.cmpf oge, %247, %248 : vector<10x128xf32>
    %cst_102 = arith.constant 1.000000e+00 : f32
    %cst_103 = arith.constant -1.000000e+00 : f32
    %250 = vector.broadcast %cst_102 : f32 to vector<10x128xf32>
    %251 = vector.broadcast %cst_103 : f32 to vector<10x128xf32>
    %252 = arith.select %249, %250, %251 : vector<10x128xi1>, vector<10x128xf32>
    %253 = math.absf %247 : vector<10x128xf32>
    %cst_104 = arith.constant 0.327591091 : f32
    %254 = vector.broadcast %cst_104 : f32 to vector<10x128xf32>
    %255 = arith.mulf %254, %253 : vector<10x128xf32>
    %cst_105 = arith.constant 1.000000e+00 : f32
    %256 = vector.broadcast %cst_105 : f32 to vector<10x128xf32>
    %257 = arith.addf %256, %255 : vector<10x128xf32>
    %cst_106 = arith.constant 1.000000e+00 : f32
    %258 = vector.broadcast %cst_106 : f32 to vector<10x128xf32>
    %259 = arith.divf %258, %257 : vector<10x128xf32>
    %cst_107 = arith.constant 1.06140542 : f32
    %260 = vector.broadcast %cst_107 : f32 to vector<10x128xf32>
    %261 = arith.mulf %259, %260 : vector<10x128xf32>
    %cst_108 = arith.constant -1.45315206 : f32
    %262 = vector.broadcast %cst_108 : f32 to vector<10x128xf32>
    %263 = arith.addf %262, %261 : vector<10x128xf32>
    %264 = arith.mulf %259, %263 : vector<10x128xf32>
    %cst_109 = arith.constant 1.42141378 : f32
    %265 = vector.broadcast %cst_109 : f32 to vector<10x128xf32>
    %266 = arith.addf %265, %264 : vector<10x128xf32>
    %267 = arith.mulf %259, %266 : vector<10x128xf32>
    %cst_110 = arith.constant -0.284496725 : f32
    %268 = vector.broadcast %cst_110 : f32 to vector<10x128xf32>
    %269 = arith.addf %268, %267 : vector<10x128xf32>
    %270 = arith.mulf %259, %269 : vector<10x128xf32>
    %cst_111 = arith.constant 0.254829586 : f32
    %271 = vector.broadcast %cst_111 : f32 to vector<10x128xf32>
    %272 = arith.addf %271, %270 : vector<10x128xf32>
    %273 = arith.mulf %259, %272 : vector<10x128xf32>
    %cst_112 = arith.constant 0.000000e+00 : f32
    %274 = vector.broadcast %cst_112 : f32 to vector<10x128xf32>
    %275 = arith.subf %274, %253 : vector<10x128xf32>
    %276 = arith.mulf %275, %253 : vector<10x128xf32>
    %277 = math.exp %276 : vector<10x128xf32>
    %278 = arith.mulf %273, %277 : vector<10x128xf32>
    %cst_113 = arith.constant 1.000000e+00 : f32
    %279 = vector.broadcast %cst_113 : f32 to vector<10x128xf32>
    %280 = arith.subf %279, %278 : vector<10x128xf32>
    %281 = arith.mulf %252, %280 : vector<10x128xf32>
    %cst_114 = arith.constant 1.000000e+00 : f32
    %282 = vector.broadcast %cst_114 : f32 to vector<10x128xf32>
    %283 = arith.addf %282, %281 : vector<10x128xf32>
    %284 = arith.mulf %245, %283 : vector<10x128xf32>
    %285 = arith.truncf %284 : vector<10x128xf32> to vector<10x128xbf16>
    %c1_115 = arith.constant 1 : index
    %c0_116 = arith.constant 0 : index
    %c0_117 = arith.constant 0 : index
    %286 = vector.load %arg11[%c1_115, %c0_116, %c0_117] : memref<2x128x32xbf16, #tpu.memory_space<vmem>>, vector<1x128x32xbf16>
    %287 = vector.shape_cast %286 : vector<1x128x32xbf16> to vector<128x32xbf16>
    %cst_118 = arith.constant dense<0.000000e+00> : vector<10x32xf32>
    %288 = tpu.matmul %285, %287, %cst_118 {dimension_numbers = #tpu.dot_dimension_numbers<[1], [0], [0], [1], [0, 0, 1, 1], [], []>} : vector<10x128xbf16>, vector<128x32xbf16>, vector<10x32xf32> -> vector<10x32xf32>
    %289 = vector.broadcast %161 : vector<1x32xf32> to vector<10x32xf32>
    %290 = arith.addf %288, %289 : vector<10x32xf32>
    %291 = arith.addf %215, %290 : vector<10x32xf32>
    %c0_119 = arith.constant 0 : index
    %c0_120 = arith.constant 0 : index
    %292 = vector.load %arg15[%c0_119, %c0_120] : memref<8x128xf32, #tpu.memory_space<vmem>>, vector<8x128xf32>
    %293 = vector.extract_strided_slice %292 {offsets = [0, 0], sizes = [1, 32], strides = [1, 1]} : vector<8x128xf32> to vector<1x32xf32>
    %294 = vector.extract_strided_slice %292 {offsets = [1, 0], sizes = [1, 32], strides = [1, 1]} : vector<8x128xf32> to vector<1x32xf32>
    %295 = vector.extract_strided_slice %292 {offsets = [2, 0], sizes = [1, 128], strides = [1, 1]} : vector<8x128xf32> to vector<1x128xf32>
    %296 = vector.extract_strided_slice %292 {offsets = [3, 0], sizes = [1, 1], strides = [1, 1]} : vector<8x128xf32> to vector<1x1xf32>
    %297 = vector.extract_strided_slice %292 {offsets = [3, 1], sizes = [1, 1], strides = [1, 1]} : vector<8x128xf32> to vector<1x1xf32>
    %298 = vector.extract_strided_slice %292 {offsets = [3, 2], sizes = [1, 1], strides = [1, 1]} : vector<8x128xf32> to vector<1x1xf32>
    %299 = vector.extract_strided_slice %292 {offsets = [4, 0], sizes = [2, 32], strides = [1, 1]} : vector<8x128xf32> to vector<2x32xf32>
    %300 = vector.extract_strided_slice %292 {offsets = [6, 0], sizes = [1, 32], strides = [1, 1]} : vector<8x128xf32> to vector<1x32xf32>
    %301 = vector.extract_strided_slice %292 {offsets = [7, 0], sizes = [1, 2], strides = [1, 1]} : vector<8x128xf32> to vector<1x2xf32>
    %c0_121 = arith.constant 0 : index
    %c0_122 = arith.constant 0 : index
    %c0_123 = arith.constant 0 : index
    %302 = vector.load %arg14[%c0_121, %c0_122, %c0_123] : memref<2x32x128xf32, #tpu.memory_space<vmem>>, vector<1x32x128xf32>
    %303 = vector.shape_cast %302 : vector<1x32x128xf32> to vector<32x128xf32>
    %c1_124 = arith.constant 1 : index
    %c0_125 = arith.constant 0 : index
    %c0_126 = arith.constant 0 : index
    %304 = vector.load %arg14[%c1_124, %c0_125, %c0_126] : memref<2x32x128xf32, #tpu.memory_space<vmem>>, vector<1x32x128xf32>
    %305 = vector.shape_cast %304 : vector<1x32x128xf32> to vector<32x128xf32>
    %306 = vector.extract_strided_slice %305 {offsets = [0, 0], sizes = [32, 2], strides = [1, 1]} : vector<32x128xf32> to vector<32x2xf32>
    %c0_127 = arith.constant 0 : index
    %c0_128 = arith.constant 0 : index
    %307 = vector.load %arg13[%c0_127, %c0_128] : memref<2x10xf32, #tpu.memory_space<vmem>>, vector<2x10xf32>
    %cst_129 = arith.constant dense<0.000000e+00> : vector<2x32xf32>
    %308 = tpu.matmul %307, %291, %cst_129 {dimension_numbers = #tpu.dot_dimension_numbers<[1], [0], [0], [1], [0, 0, 1, 1], [], []>} : vector<2x10xf32>, vector<10x32xf32>, vector<2x32xf32> -> vector<2x32xf32>
    %cst_130 = arith.constant dense<0.000000e+00> : vector<2xf32>
    %309 = vector.multi_reduction <add>, %308, %cst_130 [1] : vector<2x32xf32> to vector<2xf32>
    %310 = vector.shape_cast %309 : vector<2xf32> to vector<2x1xf32>
    %cst_131 = arith.constant 3.200000e+01 : f32
    %311 = vector.broadcast %cst_131 : f32 to vector<2x1xf32>
    %312 = arith.divf %310, %311 : vector<2x1xf32>
    %313 = vector.broadcast %312 : vector<2x1xf32> to vector<2x32xf32>
    %314 = arith.subf %308, %313 : vector<2x32xf32>
    %315 = arith.mulf %314, %314 : vector<2x32xf32>
    %cst_132 = arith.constant dense<0.000000e+00> : vector<2xf32>
    %316 = vector.multi_reduction <add>, %315, %cst_132 [1] : vector<2x32xf32> to vector<2xf32>
    %317 = vector.shape_cast %316 : vector<2xf32> to vector<2x1xf32>
    %cst_133 = arith.constant 3.200000e+01 : f32
    %318 = vector.broadcast %cst_133 : f32 to vector<2x1xf32>
    %319 = arith.divf %317, %318 : vector<2x1xf32>
    %320 = vector.broadcast %312 : vector<2x1xf32> to vector<2x32xf32>
    %321 = arith.subf %308, %320 : vector<2x32xf32>
    %cst_134 = arith.constant 9.99999997E-7 : f32
    %322 = vector.broadcast %cst_134 : f32 to vector<2x1xf32>
    %323 = arith.addf %319, %322 : vector<2x1xf32>
    %324 = math.rsqrt %323 : vector<2x1xf32>
    %325 = vector.broadcast %324 : vector<2x1xf32> to vector<2x32xf32>
    %326 = arith.mulf %321, %325 : vector<2x32xf32>
    %327 = vector.broadcast %293 : vector<1x32xf32> to vector<2x32xf32>
    %328 = arith.mulf %326, %327 : vector<2x32xf32>
    %329 = vector.broadcast %294 : vector<1x32xf32> to vector<2x32xf32>
    %330 = arith.addf %328, %329 : vector<2x32xf32>
    %cst_135 = arith.constant dense<0.000000e+00> : vector<2x2xf32>
    %331 = tpu.matmul %330, %306, %cst_135 {dimension_numbers = #tpu.dot_dimension_numbers<[1], [0], [0], [1], [0, 0, 1, 1], [], []>} : vector<2x32xf32>, vector<32x2xf32>, vector<2x2xf32> -> vector<2x2xf32>
    %332 = vector.broadcast %301 : vector<1x2xf32> to vector<2x2xf32>
    %333 = arith.addf %331, %332 : vector<2x2xf32>
    %cst_136 = arith.constant 0.000000e+00 : f32
    %334 = vector.broadcast %cst_136 : f32 to vector<2x2xf32>
    %335 = arith.maximumf %333, %334 : vector<2x2xf32>
    %cst_137 = arith.constant dense<0.000000e+00> : vector<2x32xf32>
    %336 = tpu.matmul %335, %299, %cst_137 {dimension_numbers = #tpu.dot_dimension_numbers<[1], [0], [0], [1], [0, 0, 1, 1], [], []>} : vector<2x2xf32>, vector<2x32xf32>, vector<2x32xf32> -> vector<2x32xf32>
    %337 = vector.broadcast %300 : vector<1x32xf32> to vector<2x32xf32>
    %338 = arith.addf %336, %337 : vector<2x32xf32>
    %cst_138 = arith.constant 2.000000e+00 : f32
    %339 = vector.broadcast %cst_138 : f32 to vector<2x32xf32>
    %340 = arith.mulf %339, %338 : vector<2x32xf32>
    %341 = arith.negf %340 : vector<2x32xf32>
    %342 = math.exp %341 : vector<2x32xf32>
    %cst_139 = arith.constant 1.000000e+00 : f32
    %343 = vector.broadcast %cst_139 : f32 to vector<2x32xf32>
    %344 = arith.addf %343, %342 : vector<2x32xf32>
    %345 = arith.divf %343, %344 : vector<2x32xf32>
    %346 = arith.mulf %330, %345 : vector<2x32xf32>
    %cst_140 = arith.constant dense<0.000000e+00> : vector<2xf32>
    %347 = vector.multi_reduction <add>, %346, %cst_140 [1] : vector<2x32xf32> to vector<2xf32>
    %348 = vector.shape_cast %347 : vector<2xf32> to vector<2x1xf32>
    %cst_141 = arith.constant 3.200000e+01 : f32
    %349 = vector.broadcast %cst_141 : f32 to vector<2x1xf32>
    %350 = arith.divf %348, %349 : vector<2x1xf32>
    %cst_142 = arith.constant dense<0xFF800000> : vector<2xf32>
    %351 = vector.multi_reduction <maximumf>, %346, %cst_142 [1] : vector<2x32xf32> to vector<2xf32>
    %352 = vector.shape_cast %351 : vector<2xf32> to vector<2x1xf32>
    %353 = vector.broadcast %296 : vector<1x1xf32> to vector<2x1xf32>
    %354 = arith.mulf %350, %353 : vector<2x1xf32>
    %355 = vector.broadcast %297 : vector<1x1xf32> to vector<2x1xf32>
    %356 = arith.mulf %352, %355 : vector<2x1xf32>
    %357 = arith.addf %354, %356 : vector<2x1xf32>
    %358 = vector.broadcast %298 : vector<1x1xf32> to vector<2x1xf32>
    %359 = arith.addf %357, %358 : vector<2x1xf32>
    %360 = arith.negf %359 : vector<2x1xf32>
    %361 = math.exp %360 : vector<2x1xf32>
    %cst_143 = arith.constant 1.000000e+00 : f32
    %362 = vector.broadcast %cst_143 : f32 to vector<2x1xf32>
    %363 = arith.addf %362, %361 : vector<2x1xf32>
    %364 = arith.divf %362, %363 : vector<2x1xf32>
    %365 = vector.broadcast %364 : vector<2x1xf32> to vector<2x32xf32>
    %366 = arith.mulf %346, %365 : vector<2x32xf32>
    %cst_144 = arith.constant dense<0.000000e+00> : vector<2x128xf32>
    %367 = tpu.matmul %366, %303, %cst_144 {dimension_numbers = #tpu.dot_dimension_numbers<[1], [0], [0], [1], [0, 0, 1, 1], [], []>} : vector<2x32xf32>, vector<32x128xf32>, vector<2x128xf32> -> vector<2x128xf32>
    %368 = vector.broadcast %295 : vector<1x128xf32> to vector<2x128xf32>
    %369 = arith.addf %367, %368 : vector<2x128xf32>
    %c0_145 = arith.constant 0 : index
    %c0_146 = arith.constant 0 : index
    %370 = vector.load %arg16[%c0_145, %c0_146] : memref<2x128xf32, #tpu.memory_space<vmem>>, vector<2x128xf32>
    tpu.vector_store %arg16[%c0_145, %c0_146], %369 {strides = array<i32>} : memref<2x128xf32, #tpu.memory_space<vmem>>, vector<2x128xf32>,
    return
  }
}

</mosaic_0001>

<bundles_post_ra>
// kernel: vit_cbam_forward.1
= control target key start
LH: loop header
LB: loop body
LE: loop exit
PB: predicated region body
PF: predicated region fallthrough
CT: control target
= control target key end

     0   :  { %s4750_s0 = inlined_call_operand.vmem [shape: f32[8,768], index: 0, kind: input, shape index: {}]   ;;  %s4751_s1 = inlined_call_operand.vmem [shape: bf16[768,32], index: 1, kind: input, shape index: {}]   ;;  %s4752_s2 = inlined_call_operand.vmem [shape: f32[10,8], index: 2, kind: input, shape index: {}]   ;;  %s4753_s3 = inlined_call_operand.vmem [shape: f32[10,32], index: 3, kind: input, shape index: {}]   ;;  %s4754_s4 = inlined_call_operand.vmem [shape: f32[10,40], index: 4, kind: input, shape index: {}]   ;;  %s4755_s5 = inlined_call_operand.vmem [shape: f32[40,10], index: 5, kind: input, shape index: {}]   ;;  %s4756_s6 = inlined_call_operand.vmem [shape: f32[40,32], index: 6, kind: input, shape index: {}]   ;;  %s4757_s7 = inlined_call_operand.vmem [shape: f32[40,40], index: 7, kind: input, shape index: {}]   ;;  %s4758_s8 = inlined_call_operand.vmem [shape: bf16[2,32,96], index: 8, kind: input, shape index: {}]   ;;  %s4759_s9 = inlined_call_operand.vmem [shape: bf16[2,32,32], index: 9, kind: input, shape index: {}]   ;;  %s4760_s10 = inlined_call_operand.vmem [shape: bf16[2,32,128], index: 10, kind: input, shape index: {}]   ;;  %s4761_s11 = inlined_call_operand.vmem [shape: bf16[2,128,32], index: 11, kind: input, shape index: {}]   ;;  %s4762_s12 = inlined_call_operand.vmem [shape: f32[2,8,128], index: 12, kind: input, shape index: {}]   ;;  %s4763_s13 = inlined_call_operand.vmem [shape: f32[2,10], index: 13, kind: input, shape index: {}]   ;;  %s4764_s14 = inlined_call_operand.vmem [shape: f32[2,32,128], index: 14, kind: input, shape index: {}]   ;;  %s4765_s15 = inlined_call_operand.vmem [shape: f32[8,128], index: 15, kind: input, shape index: {}]   ;;  %s4766_s16 = inlined_call_operand.hbm [shape: f32[2,128], index: 16, kind: output, shape index: {}]  }
   0x1   :  { %4768 = sst [smem:[#allocation5_spill]] %s4750_s0 }
   0x2   :  { %v3713_v0 = vld [vmem:[%s4751_s1 + $0x40] sm:$0xff]   ;;  %v3717_v4 = vld [vmem:[%s4751_s1 + $0x48] sm:$0xff]   ;;  %v3721_v8 = vld [vmem:[%s4751_s1 + $0x50] sm:$0xff]   ;;  %s4769_s27 = sld [smem:[#allocation5_spill]] }
   0x3   :  { %v3714_v1 = vld [vmem:[%s4751_s1 + $0xc0] sm:$0xff]   ;;  %3121 = vmatprep.subr.bf16.mxu0 %v3713_v0  ;;  %v3718_v5 = vld [vmem:[%s4751_s1 + $0xc8] sm:$0xff]   ;;  %v3722_v9 = vld [vmem:[%s4751_s1 + $0xd0] sm:$0xff]  }
   0x4   :  { %v3715_v2 = vld [vmem:[%s4751_s1] sm:$0xff]   ;;  %3143 = vmatprep.subr.bf16.mxu1 %v3714_v1  ;;  %v3719_v6 = vld [vmem:[%s4751_s1 + $0x8] sm:$0xff]   ;;  %v3723_v10 = vld [vmem:[%s4751_s1 + $0x10] sm:$0xff]  }
   0x5   :  { %v3716_v3 = vld [vmem:[%s4751_s1 + $0x80] sm:$0xff]   ;;  %3122 = vmatpush3.bf16.msra.mxu0 %v3715_v2  ;;  %v3720_v7 = vld [vmem:[%s4751_s1 + $0x88] sm:$0xff]   ;;  %v3724_v11 = vld [vmem:[%s4751_s1 + $0x90] sm:$0xff]  }
   0x6   :  { %3144 = vmatpush3.bf16.msra.mxu1 %v3716_v3  ;;  %3123 = vmatprep.subr.bf16.mxu0 %v3717_v4  ;;  %v3725_v12 = vld [vmem:[%s4751_s1 + $0x58] sm:$0xff]   ;;  %v3729_v16 = vld [vmem:[%s4751_s1 + $0x60] sm:$0xff]   ;;  %v3733_v20 = vld [vmem:[%s4751_s1 + $0x68] sm:$0xff]  }
   0x7   :  { %3145 = vmatprep.subr.bf16.mxu1 %v3718_v5  ;;  %v3726_v13 = vld [vmem:[%s4751_s1 + $0xd8] sm:$0xff]   ;;  %v3730_v17 = vld [vmem:[%s4751_s1 + $0xe0] sm:$0xff]   ;;  %v3734_v21 = vld [vmem:[%s4751_s1 + $0xe8] sm:$0xff]  }
   0x8   :  { %v3727_v14 = vld [vmem:[%s4751_s1 + $0x18] sm:$0xff]   ;;  %v3731_v18 = vld [vmem:[%s4751_s1 + $0x20] sm:$0xff]   ;;  %v3735_v22 = vld [vmem:[%s4751_s1 + $0x28] sm:$0xff]  }
   0x9   :  { %3124 = vmatpush3.bf16.msra.mxu0 %v3719_v6  ;;  %v3728_v15 = vld [vmem:[%s4751_s1 + $0x98] sm:$0xff]   ;;  %v3732_v19 = vld [vmem:[%s4751_s1 + $0xa0] sm:$0xff]   ;;  %v3736_v23 = vld [vmem:[%s4751_s1 + $0xa8] sm:$0xff]  }
   0xa   :  { %3146 = vmatpush3.bf16.msra.mxu1 %v3720_v7  ;;  %3125 = vmatprep.subr.bf16.mxu0 %v3721_v8  ;;  %v3737_v24 = vld [vmem:[%s4751_s1 + $0x70] sm:$0xff]   ;;  %v3741_v28 = vld [vmem:[%s4751_s1 + $0x78] sm:$0xff]   ;;  %v56_v32 = vld [vmem:[%s4769_s27 + $0x8] sm:$0xff] }
   0xb   :  { %3147 = vmatprep.subr.bf16.mxu1 %v3722_v9  ;;  %v3738_v25 = vld [vmem:[%s4751_s1 + $0xf0] sm:$0xff]   ;;  %v3742_v29 = vld [vmem:[%s4751_s1 + $0xf8] sm:$0xff]   ;;  %v55_v34 = vld [vmem:[%s4769_s27] sm:$0xff]  ;;  %v62_v35 = vpack.c.bf16 %v56_v32, %v56_v32 }
   0xc   :  { %v3739_v26 = vld [vmem:[%s4751_s1 + $0x30] sm:$0xff]   ;;  %v3743_v30 = vld [vmem:[%s4751_s1 + $0x38] sm:$0xff]   ;;  %v61_v37 = vpack.c.bf16 %v55_v34, %v55_v34  ;;  %v3745_v40 = vld [vmem:[%s4751_s1 + $0x140] sm:$0xff]  }
   0xd   :  { %3126 = vmatpush3.bf16.msra.mxu0 %v3723_v10  ;;  %v3740_v27 = vld [vmem:[%s4751_s1 + $0xb0] sm:$0xff]   ;;  %v3744_v31 = vld [vmem:[%s4751_s1 + $0xb8] sm:$0xff]   ;;  %483 = vmatprep.mubr.bf16.mxu0 %v62_v35  ;;  %v3746_v41 = vld [vmem:[%s4751_s1 + $0x100] sm:$0xff]  }
   0xe   :  { %3148 = vmatpush3.bf16.msra.mxu1 %v3724_v11  ;;  %3127 = vmatprep.subr.bf16.mxu0 %v3725_v12  ;;  %v58_v33 = vld [vmem:[%s4769_s27 + $0x18] sm:$0xff]  ;;  %v57_v38 = vld [vmem:[%s4769_s27 + $0x10] sm:$0xff]  ;;  %v3747_v42 = vld [vmem:[%s4751_s1 + $0x148] sm:$0xff]  }
   0xf   :  { %3149 = vmatprep.subr.bf16.mxu1 %v3726_v13  ;;  %v64_v36 = vpack.c.bf16 %v58_v33, %v58_v33  ;;  %v63_v39 = vpack.c.bf16 %v57_v38, %v57_v38  ;;  %v3748_v43 = vld [vmem:[%s4751_s1 + $0x108] sm:$0xff]   ;;  %v3749_v44 = vld [vmem:[%s4751_s1 + $0x150] sm:$0xff]   ;;  %v3751_v46 = vld [vmem:[%s4751_s1 + $0x158] sm:$0xff]  }
  0x10   :  { %v3750_v45 = vld [vmem:[%s4751_s1 + $0x110] sm:$0xff]   ;;  %v3752_v47 = vld [vmem:[%s4751_s1 + $0x118] sm:$0xff]   ;;  %v3753_v48 = vld [vmem:[%s4751_s1 + $0x160] sm:$0xff]  }
  0x11   :  { %3128 = vmatpush3.bf16.msra.mxu0 %v3727_v14  ;;  %523 = vmatprep.mubr.bf16.mxu1 %v64_v36  ;;  %v3754_v49 = vld [vmem:[%s4751_s1 + $0x120] sm:$0xff]   ;;  %v3755_v50 = vld [vmem:[%s4751_s1 + $0x168] sm:$0xff]   ;;  %v3757_v54 = vld [vmem:[%s4751_s1 + $0x170] sm:$0xff]  }
  0x12   :  { %3150 = vmatpush3.bf16.msra.mxu1 %v3728_v15  ;;  %3129 = vmatprep.subr.bf16.mxu0 %v3729_v16  ;;  %v60_v51 = vld [vmem:[%s4769_s27 + $0x28] sm:$0xff]  ;;  %v3758_v55 = vld [vmem:[%s4751_s1 + $0x130] sm:$0xff]   ;;  %v3759_v56 = vld [vmem:[%s4751_s1 + $0x178] sm:$0xff]  }
  0x13   :  { %3151 = vmatprep.subr.bf16.mxu1 %v3730_v17  ;;  %v66_v52 = vpack.c.bf16 %v60_v51, %v60_v51  ;;  %v3756_v53 = vld [vmem:[%s4751_s1 + $0x128] sm:$0xff]   ;;  %v3760_v57 = vld [vmem:[%s4751_s1 + $0x138] sm:$0xff]   ;;  %v59_v58 = vld [vmem:[%s4769_s27 + $0x20] sm:$0xff] }
  0x14   :  { %v65_v59 = vpack.c.bf16 %v59_v58, %v59_v58 }
  0x15   :  { %3130 = vmatpush3.bf16.msra.mxu0 %v3731_v18 }
  0x16   :  { %3152 = vmatpush3.bf16.msra.mxu1 %v3732_v19  ;;  %3131 = vmatprep.subr.bf16.mxu0 %v3733_v20 }
  0x17   :  { %3153 = vmatprep.subr.bf16.mxu1 %v3734_v21 }
  0x19   :  { %3132 = vmatpush3.bf16.msra.mxu0 %v3735_v22 }
  0x1a   :  { %3154 = vmatpush3.bf16.msra.mxu1 %v3736_v23  ;;  %3133 = vmatprep.subr.bf16.mxu0 %v3737_v24 }
  0x1b   :  { %3155 = vmatprep.subr.bf16.mxu1 %v3738_v25 }
  0x1d   :  { %3134 = vmatpush3.bf16.msra.mxu0 %v3739_v26 }
  0x1e   :  { %3156 = vmatpush3.bf16.msra.mxu1 %v3740_v27  ;;  %3135 = vmatprep.subr.bf16.mxu0 %v3741_v28 }
  0x1f   :  { %3157 = vmatprep.subr.bf16.mxu1 %v3742_v29 }
  0x21   :  { %3136 = vmatpush3.bf16.msra.mxu0 %v3743_v30 }
  0x22   :  { %3158 = vmatpush3.bf16.msra.mxu1 %v3744_v31  ;;  %3165 = vmatprep.subr.bf16.mxu0 %v3745_v40 }
  0x24   :  { %484 = vmatmul.mubr.bf16.vlgmr.msra.gmra.mrb[0].mxu0 %v61_v37 }
  0x25   :  { %524 = vmatmul.mubr.bf16.vlgmr.msra.gmra.mrb[0].mxu1 %v63_v39  ;;  %3166 = vmatpush3.bf16.msra.mxu0 %v3746_v41 }
  0x26   :  { %3167 = vmatprep.subr.bf16.mxu0 %v3747_v42  ;;  %563 = vmatprep.mubr.bf16.mxu0 %v66_v52 }
  0x29   :  { %3168 = vmatpush3.bf16.msra.mxu0 %v3748_v43 }
  0x2a   :  { %3169 = vmatprep.subr.bf16.mxu0 %v3749_v44 }
  0x2d   :  { %3170 = vmatpush3.bf16.msra.mxu0 %v3750_v45 }
  0x2e   :  { %3171 = vmatprep.subr.bf16.mxu0 %v3751_v46 }
  0x31   :  { %3172 = vmatpush3.bf16.msra.mxu0 %v3752_v47 }
  0x32   :  { %3173 = vmatprep.subr.bf16.mxu0 %v3753_v48 }
  0x35   :  { %3174 = vmatpush3.bf16.msra.mxu0 %v3754_v49 }
  0x36   :  { %3175 = vmatprep.subr.bf16.mxu0 %v3755_v50 }
  0x39   :  { %3176 = vmatpush3.bf16.msra.mxu0 %v3756_v53 }
  0x3a   :  { %3177 = vmatprep.subr.bf16.mxu0 %v3757_v54 }
  0x3d   :  { %3178 = vmatpush3.bf16.msra.mxu0 %v3758_v55 }
  0x3e   :  { %3179 = vmatprep.subr.bf16.mxu0 %v3759_v56 }
  0x41   :  { %3180 = vmatpush3.bf16.msra.mxu0 %v3760_v57 }
  0x42   :  { %21 = vsyncpa [#allocation3], 0  ;;  %v571_v60 = vld [vmem:[%s4752_s2] sm:$0xff]  ;;  %vm575_vm0 = vcmask 64512   ;;  %v572_v14 = vld [vmem:[%s4752_s2 + $0x8] sm:$0x3]  ;;  %v704_v39 = vlaneseq }
  0x43   :  { %3313 = vmatprep.mubr.msk.f32.mxu1 %vm575_vm0, %v571_v60  ;;  %v573_v15 = vld [vmem:[%s4753_s3] sm:$0xff]  ;;  %v574_v17 = vld [vmem:[%s4753_s3 + $0x8] sm:$0x3]  ;;  %vm675_vm1 = vcmask 261120   ;;  %vm679_vm2 = vcmask 254976   ;;  %v3871_v34 = vmov 0.0  }
  0x44   :  { %564 = vmatmul.mubr.bf16.vlgmr.msra.gmra.mrb[4].mxu0 %v65_v59  ;;  %v3761_v33 = vld [vmem:[%s4758_s8] sm:$0xff]   ;;  %v3762_v35 = vld [vmem:[%s4758_s8 + $0x8] sm:$0xff]   ;;  %vm3872_vm3 = vmmov 0   ;;  %v4167_v43 = vshrl.u32 %v704_v39, 7  ;;  %v3873_v59 = vmov 0.0|0.0   ;;  %s3874_s23 = smov 96   ;;  %vm4263_vm8 = vmpackc.low %vm675_vm1, %vm675_vm1 }
  0x45   :  { %3347 = vmatprep.mubr.msk.f32.mxu0 %vm3872_vm3, %v3871_v34  ;;  %v4175_v45 = vld [vmem:[%s4762_s12] sm:$0xff]  ;;  %3596 = vmatprep.subr.bf16.mxu0 %v3873_v59  ;;  %vm806_vm4 = vcmask 1041408   ;;  %vm3875_vm5 = vmmov 1   ;;  %vm790_vm7 = vcmask 80896   ;;  %vm1106_vm9 = vcmask 320512   ;;  %s3876_s1 = smov 64  }
  0x46   :  { %v4170_v44 = vsub.s32 0, %v4167_v43  ;;  %v4180_v49 = vsub.s32 1, %v4167_v43  ;;  %v4188_v58 = vsub.s32 2, %v4167_v43  ;;  %vm4199_vm6 = vmpackc.low %vm806_vm4, %vm3875_vm5  ;;  %vm1102_vm10 = vcmask 326656  }
  0x47   :  { %vm2739_vm15 = vcmask 15360  }
  0x48   :  { %v707_v47 = vrot.slane %v4175_v45, %v4170_v44  ;;  %v713_v53 = vrot.slane %v4175_v45, %v4180_v49  ;;  %v724_v60 = vrot.slane %v4175_v45, %v4188_v58 }
  0xf7   :  { %v3137_v61 = vpop.f32.mrb[0].mxu0 }
  0xf8   :  { %v3159_v62 = vpop.f32.mrb[0].mxu1  ;;  %v3138_v63 = vpop.f32.mrb[1].mxu0 }
  0xf9   :  { %v3160_v0 = vpop.f32.mrb[1].mxu1  ;;  %v3139_v1 = vadd.f32 %v3138_v63, %v3137_v61  ;;  %v3140_v3 = vpop.f32.mrb[2].mxu0 }
  0xfa   :  { %v3161_v2 = vadd.f32 %v3160_v0, %v3159_v62  ;;  %v3162_v4 = vpop.f32.mrb[2].mxu1  ;;  %v3141_v5 = vpop.f32.mrb[3].mxu0 }
  0xfb   :  { %v3163_v6 = vpop.f32.mrb[3].mxu1 }
  0xfc   :  { %v526_v7 = vadd.f32 %v3161_v2, %v3139_v1 }
 0x117   :  { %v3181_v8 = vpop.f32.mrb[4].mxu0 }
 0x118   :  { %v3182_v9 = vpop.f32.mrb[5].mxu0 }
 0x119   :  { %v3183_v10 = vadd.f32 %v3182_v9, %v3181_v8  ;;  %v3184_v11 = vpop.f32.mrb[6].mxu0  ;;  %v4208_v9 = vld [vmem:[%s4755_s5] sm:$0xff] }
 0x11a   :  { %v3185_v12 = vpop.f32.mrb[7].mxu0  ;;  %v4226_v11 = vld [vmem:[%s4755_s5 + $0x10] sm:$0xff] }
 0x11b   :  { %v566_v13 = vadd.f32 %v3183_v10, %v526_v7  ;;  %v4217_v10 = vld [vmem:[%s4755_s5 + $0x8] sm:$0xff]  ;;  %v4235_v12 = vld [vmem:[%s4755_s5 + $0x18] sm:$0xff] }
 0x11d   :  { %3311 = vmatprep.subr.mxu1 %v566_v13 }
 0x11e   :  { %3312 = vmatpush3.msra.mxu1 %v566_v13  ;;  %v4244_v13 = vld [vmem:[%s4755_s5 + $0x20] sm:$0xff] }
 0x11f   :  { %3314 = vmatmul.mubr.msk.f32.vlgmr.msra.gmra.mrb[4].mxu1 %vm575_vm0, %v572_v14  ;;  %3316 = vmatprep.subr.bf16.mxu1 %v3871_v34 }
 0x120   :  { %3317 = vmatpush3.bf16.msra.mxu1 %v3761_v33  ;;  %3320 = vmatprep.mubr.msk.bf16.mxu1 %vm3872_vm3, %v3871_v34 }
 0x121   :  { %3318 = vmatprep.subr.bf16.mxu1 %v3871_v34 }
 0x124   :  { %3319 = vmatpush3.bf16.msra.mxu1 %v3762_v35 }
 0x125   :  { %3592 = vmatprep.subr.bf16.mxu1 %v3873_v59 }
 0x1f2   :  { %v3315_v16 = vpop.f32.mrb[4].mxu1 }
 0x1f3   :  { %v648_v18 = vpop.f32.mrb[5].mxu1  ;;  %v4145_v20 = vadd.f32 %v3315_v16, %v574_v17  ;;  %v4252_v17 = vld [vmem:[%s4756_s6] sm:$0xff] }
 0x1f4   :  { %v4143_v19 = vadd.f32 %v648_v18, %v573_v15  ;;  %v4257_v18 = vld [vmem:[%s4756_s6 + $0x8] sm:$0xff] }
 0x1f5   :  { %v680_v22 = vsel %vm679_vm2, %v4145_v20, 0.0 }
 0x1f6   :  { %v676_v21 = vsel %vm675_vm1, %v4143_v19, 0.0 }
 0x1f7   :  { %677 = vadd.xlane.f32.xlu0 %v676_v21 }
 0x1fb   :  { %681 = vadd.xlane.f32.xlu0 %v680_v22 }
 0x284   :  { %v678_v23 = vpop.xlane.xlu0 %677 }
 0x285   :  { %v684_v24 = vmul.f32 0.03125, %v678_v23 }
 0x287   :  { %v686_v25 = vsub.f32 %v4143_v19, %v684_v24 }
 0x288   :  { %v682_v26 = vpop.xlane.xlu0 %681 }
 0x289   :  { %v685_v27 = vmul.f32 0.03125, %v682_v26  ;;  %v688_v28 = vmul.f32 %v686_v25, %v686_v25 }
 0x28b   :  { %v687_v29 = vsub.f32 %v4145_v20, %v685_v27  ;;  %v690_v30 = vsel %vm675_vm1, %v688_v28, 0.0 }
 0x28c   :  { %691 = vadd.xlane.f32.xlu1 %v690_v30  ;;  %v4279_v30 = vld [vmem:[%s4756_s6 + $0x18] sm:$0xff] }
 0x28d   :  { %v689_v31 = vmul.f32 %v687_v29, %v687_v29 }
 0x28f   :  { %v693_v32 = vsel %vm679_vm2, %v689_v31, 0.0 }
 0x290   :  { %694 = vadd.xlane.f32.xlu1 %v693_v32 }
 0x319   :  { %v692_v36 = vpop.xlane.xlu1 %691 }
 0x31a   :  { %v696_v37 = vmul.f32 0.03125, %v692_v36  ;;  %v4286_v36 = vld [vmem:[%s4756_s6 + $0x20] sm:$0xff] }
 0x31c   :  { %v698_v38 = vadd.f32 1e-06, %v696_v37 }
 0x31d   :  { %v695_v40 = vpop.xlane.xlu1 %694 }
 0x31e   :  { %3789 = vrsqrt.f32 %v698_v38  ;;  %v697_v41 = vmul.f32 0.03125, %v695_v40 }
 0x320   :  { %v699_v42 = vadd.f32 1e-06, %v697_v41 }
 0x322   :  { %3791 = vrsqrt.f32 %v699_v42  ;;  %v4299_v42 = vld [vmem:[%s4754_s4 + $0x8] sm:$0x3] }
 0x328   :  { %v3790_v46 = vpop.eup %3789 }
 0x329   :  { %v702_v48 = vmul.f32 %v3790_v46, %v686_v25 }
 0x32b   :  { %v708_v51 = vmul.f32 %v707_v47, %v702_v48 }
 0x32c   :  { %v3792_v50 = vpop.eup %3791 }
 0x32d   :  { %v703_v52 = vmul.f32 %v3792_v50, %v687_v29  ;;  %v714_v55 = vadd.f32 %v713_v53, %v708_v51  ;;  %v4272_v29 = vld [vmem:[%s4756_s6 + $0x10] sm:$0xff] }
 0x32f   :  { %v709_v54 = vmul.f32 %v707_v47, %v703_v52  ;;  %v4304_v47 = vld [vmem:[%s4754_s4] sm:$0xff] }
 0x331   :  { %v715_v56 = vadd.f32 %v713_v53, %v709_v54  ;;  %v667_v54 = vld [vmem:[%s4757_s7] sm:$0xff] }
 0x333   :  { %v716_v57 = vpack.c.bf16 %v715_v56, %v714_v55  ;;  %v668_v55 = vld [vmem:[%s4757_s7 + $0x8] sm:$0xff] }
 0x334   :  { %v4318_v56 = vpack.c.bf16 %v668_v55, %v667_v54 }
 0x335   :  { %3321 = vmatmul.mubr.msk.bf16.vlgmr.msra.gmra.mrb[8].mxu1 %vm675_vm1, %v716_v57  ;;  %v669_v57 = vld [vmem:[%s4757_s7 + $0x10] sm:$0xff] }
 0x336   :  { %3328 = vmatprep.mubr.msk.f32.mxu1 %vm3872_vm3, %v3871_v34 }
 0x408   :  { %v774_v61 = vpop.f32.mrb[8].mxu1 }
 0x409   :  { %v3322_v62 = vpop.f32.mrb[9].mxu1  ;;  %v775_v0 = vadd.f32 %v774_v61, %v724_v60 }
 0x40a   :  { %v777_v63 = vpop.f32.mrb[10].mxu1  ;;  %v4335_v62 = vld [vmem:[%s4757_s7 + $0x20] sm:$0xff] }
 0x40b   :  { %v778_v1 = vadd.f32 %v777_v63, %v724_v60  ;;  %v3323_v2 = vpop.f32.mrb[11].mxu1  ;;  %v781_v14 = vmul.f32 0.35355338, %v775_v0  ;;  %v670_v60 = vld [vmem:[%s4757_s7 + $0x18] sm:$0xff] }
 0x40c   :  { %v4328_v61 = vpack.c.bf16 %v670_v60, %v669_v57  ;;  %v3764_v57 = vld [vmem:[%s4759_s9 + $0x8] sm:$0xff]  }
 0x40d   :  { %v4194_v3 = vpack.i.bf16 %v778_v1, %v775_v0  ;;  %v782_v41 = vmul.f32 0.35355338, %v778_v1 }
 0x40f   :  { %3692 = vrot.lane.b32.xlu0 %v4194_v3, %s3874_s23 }
 0x481   :  { %v3693_v4 = vpop.permute.xlu0 %3692 }
 0x482   :  { %v3695_v5 = vunpack.i.h.bf16 %v3693_v4  ;;  %v3694_v6 = vunpack.i.l.bf16 %v3693_v4 }
 0x484   :  { %v3593_v8 = vpack.c.bf16 %v3695_v5, %v3694_v6 }
 0x486   :  { %3595 = vmatpush3.bf16.msk.msra.mxu1 %vm4199_vm6, %v3593_v8 }
 0x489   :  { %3329 = vmatmul.mubr.msk.f32.vlgmr.msra.gmra.mrb[6].mxu1 %vm790_vm7, %v4208_v9 }
 0x48a   :  { %3331 = vmatprep.mubr.msk.f32.mxu1 %vm3872_vm3, %v3871_v34 }
 0x48d   :  { %3332 = vmatmul.mubr.msk.f32.gmra.mrb[12].mxu1 %vm790_vm7, %v4217_v10 }
 0x48e   :  { %3334 = vmatprep.mubr.msk.f32.mxu1 %vm3872_vm3, %v3871_v34 }
 0x491   :  { %3335 = vmatmul.mubr.msk.f32.gmra.mrb[14].mxu1 %vm790_vm7, %v4226_v11 }
 0x492   :  { %3337 = vmatprep.mubr.msk.f32.mxu1 %vm3872_vm3, %v3871_v34 }
 0x495   :  { %3338 = vmatmul.mubr.msk.f32.gmra.mrb[16].mxu1 %vm790_vm7, %v4235_v12 }
 0x496   :  { %3340 = vmatprep.mubr.msk.f32.mxu1 %vm3872_vm3, %v3871_v34 }
 0x499   :  { %3341 = vmatmul.mubr.msk.f32.gmra.mrb[18].mxu1 %vm790_vm7, %v4244_v13 }
 0x49a   :  { %3372 = vmatprep.mubr.msk.f32.mxu1 %vm675_vm1, %v781_v14 }
 0x55c   :  { %v875_v15 = vpop.f32.mrb[6].mxu1 }
 0x55d   :  { %v3330_v16 = vpop.f32.mrb[7].mxu1  ;;  %v899_v22 = vmul.f32 %v875_v15, %v4252_v17 }
 0x560   :  { %v880_v21 = vpop.f32.mrb[12].mxu1 }
 0x561   :  { %v900_v23 = vmul.f32 %v880_v21, %v4257_v18  ;;  %v3333_v24 = vpop.f32.mrb[13].mxu1  ;;  %v3763_v21 = vld [vmem:[%s4759_s9] sm:$0xff]  }
 0x563   :  { %v3600_v26 = vpack.c.bf16 %v900_v23, %v899_v22 }
 0x564   :  { %v885_v27 = vpop.f32.mrb[14].mxu1 }
 0x565   :  { %v3336_v28 = vpop.f32.mrb[15].mxu1  ;;  %3602 = vmatprep.subr.msk.bf16.mxu1 %vm4263_vm8, %v3600_v26  ;;  %v901_v32 = vmul.f32 %v885_v27, %v4272_v29 }
 0x566   :  { %3605 = vmatpush3.bf16.xpose.msk.msra.mxu1 %vm4263_vm8, %v3600_v26 }
 0x568   :  { %v890_v31 = vpop.f32.mrb[16].mxu1 }
 0x569   :  { %v902_v33 = vmul.f32 %v890_v31, %v4279_v30  ;;  %v3339_v35 = vpop.f32.mrb[17].mxu1 }
 0x56b   :  { %v3606_v37 = vpack.c.bf16 %v902_v33, %v901_v32 }
 0x56c   :  { %v895_v38 = vpop.f32.mrb[18].mxu1 }
 0x56d   :  { %3608 = vmatprep.subr.msk.bf16.mxu1 %vm4263_vm8, %v3606_v37  ;;  %v903_v39 = vmul.f32 %v895_v38, %v4286_v36  ;;  %v3342_v40 = vpop.f32.mrb[19].mxu1 }
 0x56e   :  { %3611 = vmatpush3.bf16.xpose.msk.msra.mxu1 %vm4263_vm8, %v3606_v37 }
 0x56f   :  { %3370 = vmatprep.subr.msk.mxu1 %vm675_vm1, %v903_v39 }
 0x576   :  { %3371 = vmatpush3.xpose.msk.msra.mxu1 %vm675_vm1, %v903_v39 }
 0x577   :  { %3613 = vmatprep.subr.bf16.mxu1 %v4318_v56 }
 0x579   :  { %3373 = vmatmul.mubr.msk.f32.vlgmr.msra.gmra.mrb[20].mxu1 %vm675_vm1, %v782_v41 }
 0x57a   :  { %3615 = vmatpush3.bf16.msra.mxu1 %v4318_v56 }
 0x57b   :  { %3617 = vmatprep.subr.bf16.mxu1 %v4328_v61 }
 0x57e   :  { %3619 = vmatpush3.bf16.msra.mxu1 %v4328_v61 }
 0x57f   :  { %3383 = vmatprep.subr.mxu1 %v4335_v62 }
 0x582   :  { %3384 = vmatpush3.msra.mxu1 %v4335_v62 }
 0x583   :  { %3401 = vmatprep.subr.bf16.mxu1 %v3871_v34 }
 0x64c   :  { %v3374_v46 = vpop.f32.mrb[20].mxu1 }
 0x64d   :  { %v1099_v48 = vadd.f32 %v3374_v46, %v4299_v42  ;;  %v1093_v50 = vpop.f32.mrb[21].mxu1 }
 0x64e   :  { %v1094_v51 = vadd.f32 %v1093_v50, %v4304_v47 }
 0x64f   :  { %v1107_v52 = vsel %vm1106_vm9, %v1099_v48, -inf }
 0x650   :  { %1108 = vmax.xlane.f32.xlu1 %v1107_v52  ;;  %v1103_v53 = vsel %vm1102_vm10, %v1094_v51, -inf }
 0x654   :  { %1104 = vmax.xlane.f32.xlu1 %v1103_v53 }
 0x665   :  { %3697 = vrot.lane.b32.xlu1 %v4194_v3, %s3876_s1 }
 0x6dd   :  { %v1109_v63 = vpop.xlane.xlu1 %1108 }
 0x6de   :  { %v1111_v0 = vsub.f32 %v1099_v48, %v1109_v63 }
 0x6e0   :  { %v1114_v3 = vmul.f32 1.442695, %v1111_v0 }
 0x6e1   :  { %v1105_v1 = vpop.xlane.xlu1 %1104 }
 0x6e2   :  { %v1110_v2 = vsub.f32 %v1094_v51, %v1105_v1  ;;  %v4386_v1 = vsub.s32 3, %v4167_v43 }
 0x6e4   :  { %v1112_v4 = vmul.f32 1.442695, %v1110_v2  ;;  %v1290_v2 = vrot.slane %v4175_v45, %v4386_v1 }
 0x6e5   :  { %v3698_v5 = vpop.permute.xlu1 %3697 }
 0x6e6   :  { %3793 = vpow2.f32 %v1112_v4  ;;  %v3700_v6 = vunpack.i.h.bf16 %v3698_v5  ;;  %v3699_v8 = vunpack.i.l.bf16 %v3698_v5 }
 0x6e7   :  { %3795 = vpow2.f32 %v1114_v3 }
 0x6e8   :  { %v3597_v14 = vpack.c.bf16 %v3700_v6, %v3699_v8 }
 0x6ea   :  { %3599 = vmatpush3.bf16.msk.msra.mxu0 %vm4199_vm6, %v3597_v14 }
 0x6ed   :  { %3348 = vmatmul.mubr.msk.f32.vlgmr.msra.gmra.mrb[8].mxu0 %vm790_vm7, %v4208_v9 }
 0x6ee   :  { %3350 = vmatprep.mubr.msk.f32.mxu0 %vm3872_vm3, %v3871_v34 }
 0x6f0   :  { %v3794_v15 = vpop.eup %3793 }
 0x6f1   :  { %v3796_v16 = vpop.eup %3795  ;;  %3351 = vmatmul.mubr.msk.f32.gmra.mrb[10].mxu0 %vm790_vm7, %v4217_v10  ;;  %3385 = vmatprep.mubr.msk.f32.mxu1 %vm1102_vm10, %v3794_v15 }
 0x6f2   :  { %3386 = vmatmul.mubr.msk.f32.vlgmr.msra.gmra.mrb[22].mxu1 %vm1102_vm10, %v3796_v16  ;;  %3353 = vmatprep.mubr.msk.f32.mxu0 %vm3872_vm3, %v3871_v34 }
 0x6f3   :  { %3405 = vmatprep.mubr.msk.bf16.mxu1 %vm3872_vm3, %v3871_v34  ;;  %3402 = vmatpush3.bf16.msra.mxu1 %v3763_v21 }
 0x6f4   :  { %3403 = vmatprep.subr.bf16.mxu1 %v3871_v34 }
 0x6f5   :  { %3354 = vmatmul.mubr.msk.f32.gmra.mrb[12].mxu0 %vm790_vm7, %v4226_v11 }
 0x6f6   :  { %3356 = vmatprep.mubr.msk.f32.mxu0 %vm3872_vm3, %v3871_v34 }
 0x6f7   :  { %3404 = vmatpush3.bf16.msra.mxu1 %v3764_v57 }
 0x6f8   :  { %3417 = vmatprep.subr.bf16.mxu1 %v3871_v34 }
 0x6f9   :  { %3357 = vmatmul.mubr.msk.f32.gmra.mrb[14].mxu0 %vm790_vm7, %v4235_v12 }
 0x6fa   :  { %3359 = vmatprep.mubr.msk.f32.mxu0 %vm3872_vm3, %v3871_v34 }
 0x6fd   :  { %3360 = vmatmul.mubr.msk.f32.gmra.mrb[16].mxu0 %vm790_vm7, %v4244_v13 }
 0x7c0   :  { %v977_v22 = vpop.f32.mrb[8].mxu0 }
 0x7c1   :  { %v3349_v23 = vpop.f32.mrb[9].mxu0  ;;  %v1001_v26 = vmul.f32 %v977_v22, %v4252_v17 }
 0x7c4   :  { %v982_v24 = vpop.f32.mrb[10].mxu0 }
 0x7c5   :  { %v1002_v27 = vmul.f32 %v982_v24, %v4257_v18  ;;  %v3352_v28 = vpop.f32.mrb[11].mxu0  ;;  %v3387_v31 = vpop.f32.mrb[22].mxu1 }
 0x7c6   :  { %v1188_v32 = vpop.f32.mrb[23].mxu1 }
 0x7c7   :  { %v3620_v33 = vpack.c.bf16 %v1002_v27, %v1001_v26  ;;  %3797 = vrcp.f32 %v1188_v32 }
 0x7c8   :  { %3799 = vrcp.f32 %v3387_v31  ;;  %v987_v35 = vpop.f32.mrb[12].mxu0 }
 0x7c9   :  { %v3355_v37 = vpop.f32.mrb[13].mxu0  ;;  %3621 = vmatprep.subr.bf16.mxu0 %v3620_v33  ;;  %v1003_v39 = vmul.f32 %v987_v35, %v4272_v29  ;;  %v3765_v35 = vld [vmem:[%s4760_s10] sm:$0xff]  }
 0x7ca   :  { %3623 = vmatpush3.bf16.msra.mxu0 %v3620_v33  ;;  %v3766_v37 = vld [vmem:[%s4760_s10 + $0x8] sm:$0xff]  }
 0x7cc   :  { %v992_v38 = vpop.f32.mrb[14].mxu0 }
 0x7cd   :  { %v1004_v40 = vmul.f32 %v992_v38, %v4279_v30  ;;  %v3358_v41 = vpop.f32.mrb[15].mxu0 }
 0x7cf   :  { %v3624_v46 = vpack.c.bf16 %v1004_v40, %v1003_v39 }
 0x7d0   :  { %v997_v48 = vpop.f32.mrb[16].mxu0 }
 0x7d1   :  { %v3798_v50 = vpop.eup %3797  ;;  %v1005_v51 = vmul.f32 %v997_v48, %v4286_v36  ;;  %3625 = vmatprep.subr.bf16.mxu0 %v3624_v46  ;;  %v3361_v52 = vpop.f32.mrb[17].mxu0 }
 0x7d2   :  { %v3800_v53 = vpop.eup %3799  ;;  %3627 = vmatpush3.bf16.msra.mxu0 %v3624_v46  ;;  %v1198_v54 = vmul.f32 %v3798_v50, %v3794_v15  ;;  %v1377_v50 = vsub.s32 4, %v4167_v43 }
 0x7d3   :  { %3396 = vmatprep.subr.mxu0 %v1005_v51  ;;  %v1200_v55 = vmul.f32 %v3800_v53, %v3796_v16 }
 0x7d4   :  { %3398 = vmatprep.mubr.msk.f32.mxu0 %vm1102_vm10, %v1198_v54  ;;  %v1378_v52 = vrot.slane %v4175_v45, %v1377_v50  ;;  %v1383_v54 = vsub.s32 5, %v4167_v43 }
 0x7d6   :  { %3397 = vmatpush3.msra.mxu0 %v1005_v51 }
 0x7d7   :  { %3399 = vmatmul.mubr.msk.f32.vlgmr.msra.gmra.mrb[18].mxu0 %vm1102_vm10, %v1200_v55  ;;  %3409 = vmatprep.subr.bf16.mxu0 %v3871_v34 }
 0x7d8   :  { %3413 = vmatprep.mubr.msk.bf16.mxu0 %vm3872_vm3, %v3871_v34  ;;  %3410 = vmatpush3.bf16.msra.mxu0 %v3765_v35 }
 0x7d9   :  { %3411 = vmatprep.subr.bf16.mxu0 %v3871_v34 }
 0x7dc   :  { %3412 = vmatpush3.bf16.msra.mxu0 %v3766_v37 }
 0x7dd   :  { %3437 = vmatprep.subr.bf16.mxu0 %v3871_v34 }
 0x8aa   :  { %v3400_v60 = vpop.f32.mrb[18].mxu0 }
 0x8ab   :  { %v1273_v63 = vpop.f32.mrb[19].mxu0 }
 0x8ac   :  { %v1282_v0 = vpack.c.bf16 %v3400_v60, %v1273_v63  ;;  %v1384_v63 = vrot.slane %v4175_v45, %v1383_v54 }
 0x8ae   :  { %3406 = vmatmul.mubr.msk.bf16.vlgmr.msra.gmra.mrb[24].mxu1 %vm675_vm1, %v1282_v0 }
 0x8af   :  { %3433 = vmatprep.mubr.msk.bf16.mxu1 %vm3872_vm3, %v3871_v34 }
 0x981   :  { %v1340_v3 = vpop.f32.mrb[24].mxu1 }
 0x982   :  { %v1341_v4 = vadd.f32 %v1340_v3, %v1290_v2  ;;  %v3407_v5 = vpop.f32.mrb[25].mxu1 }
 0x983   :  { %v1343_v6 = vpop.f32.mrb[26].mxu1  ;;  %v3767_v5 = vld [vmem:[%s4761_s11] sm:$0xff]  }
 0x984   :  { %v4391_v8 = vadd.f32 %v1341_v4, %v4143_v19  ;;  %v1344_v14 = vadd.f32 %v1343_v6, %v1290_v2  ;;  %v3408_v15 = vpop.f32.mrb[27].mxu1  ;;  %3418 = vmatpush3.bf16.msra.mxu1 %v3767_v5  ;;  %v3768_v6 = vld [vmem:[%s4761_s11 + $0x8] sm:$0xff]  }
 0x985   :  { %3419 = vmatprep.subr.bf16.mxu1 %v3871_v34  ;;  %v3770_v15 = vld [vmem:[%s4761_s11 + $0x18] sm:$0xff]  }
 0x986   :  { %v4394_v16 = vadd.f32 %v1344_v14, %v4145_v20  ;;  %v1349_v21 = vsel %vm675_vm1, %v4391_v8, 0.0  ;;  %v3769_v14 = vld [vmem:[%s4761_s11 + $0x10] sm:$0xff]  }
 0x987   :  { %1350 = vadd.xlane.f32.xlu0 %v1349_v21  ;;  %v3771_v21 = vld [vmem:[%s4761_s11 + $0x20] sm:$0xff]  }
 0x988   :  { %v1352_v22 = vsel %vm679_vm2, %v4394_v16, 0.0  ;;  %3420 = vmatpush3.bf16.msra.mxu1 %v3768_v6 }
 0x989   :  { %1353 = vadd.xlane.f32.xlu1 %v1352_v22  ;;  %3421 = vmatprep.subr.bf16.mxu1 %v3871_v34  ;;  %v3772_v22 = vld [vmem:[%s4761_s11 + $0x28] sm:$0xff]  }
 0x98c   :  { %3422 = vmatpush3.bf16.msra.mxu1 %v3769_v14 }
 0x98d   :  { %3423 = vmatprep.subr.bf16.mxu1 %v3871_v34 }
 0x990   :  { %3424 = vmatpush3.bf16.msra.mxu1 %v3770_v15 }
 0x991   :  { %3425 = vmatprep.subr.bf16.mxu1 %v3871_v34 }
 0x994   :  { %3426 = vmatpush3.bf16.msra.mxu1 %v3771_v21 }
 0x995   :  { %3427 = vmatprep.subr.bf16.mxu1 %v3871_v34 }
 0x998   :  { %3428 = vmatpush3.bf16.msra.mxu1 %v3772_v22 }
 0x999   :  { %3429 = vmatprep.subr.bf16.mxu1 %v3871_v34 }
 0xa14   :  { %v1351_v23 = vpop.xlane.xlu0 %1350 }
 0xa15   :  { %v1355_v24 = vmul.f32 0.03125, %v1351_v23  ;;  %v3773_v23 = vld [vmem:[%s4761_s11 + $0x30] sm:$0xff]  }
 0xa16   :  { %v1354_v26 = vpop.xlane.xlu1 %1353  ;;  %3430 = vmatpush3.bf16.msra.mxu1 %v3773_v23 }
 0xa17   :  { %v1357_v27 = vsub.f32 %v4391_v8, %v1355_v24  ;;  %v1356_v19 = vmul.f32 0.03125, %v1354_v26  ;;  %3431 = vmatprep.subr.bf16.mxu1 %v3871_v34  ;;  %v3774_v24 = vld [vmem:[%s4761_s11 + $0x38] sm:$0xff]   ;;  %v4456_v26 = vsub.s32 6, %v4167_v43 }
 0xa19   :  { %v1358_v28 = vsub.f32 %v4394_v16, %v1356_v19  ;;  %v1359_v31 = vmul.f32 %v1357_v27, %v1357_v27 }
 0xa1a   :  { %3432 = vmatpush3.bf16.msra.mxu1 %v3774_v24 }
 0xa1b   :  { %v1361_v20 = vsel %vm675_vm1, %v1359_v31, 0.0  ;;  %v1360_v32 = vmul.f32 %v1358_v28, %v1358_v28  ;;  %3632 = vmatprep.subr.bf16.mxu1 %v3873_v59 }
 0xa1c   :  { %1362 = vadd.xlane.f32.xlu0 %v1361_v20 }
 0xa1d   :  { %v1364_v33 = vsel %vm679_vm2, %v1360_v32, 0.0 }
 0xa20   :  { %1365 = vadd.xlane.f32.xlu0 %v1364_v33 }
 0xaa9   :  { %v1363_v38 = vpop.xlane.xlu0 %1362 }
 0xaaa   :  { %v1367_v39 = vmul.f32 0.03125, %v1363_v38 }
 0xaac   :  { %v1369_v40 = vadd.f32 1e-06, %v1367_v39 }
 0xaad   :  { %v1366_v41 = vpop.xlane.xlu0 %1365 }
 0xaae   :  { %3801 = vrsqrt.f32 %v1369_v40  ;;  %v1368_v46 = vmul.f32 0.03125, %v1366_v41 }
 0xab0   :  { %v1370_v48 = vadd.f32 1e-06, %v1368_v46 }
 0xab2   :  { %3803 = vrsqrt.f32 %v1370_v48 }
 0xab8   :  { %v3802_v51 = vpop.eup %3801 }
 0xab9   :  { %v1373_v53 = vmul.f32 %v3802_v51, %v1357_v27  ;;  %v1395_v27 = vrot.slane %v4175_v45, %v4456_v26 }
 0xabb   :  { %v1379_v57 = vmul.f32 %v1378_v52, %v1373_v53 }
 0xabc   :  { %v3804_v55 = vpop.eup %3803 }
 0xabd   :  { %v1374_v60 = vmul.f32 %v3804_v55, %v1358_v28  ;;  %v1385_v2 = vadd.f32 %v1384_v63, %v1379_v57 }
 0xabf   :  { %v1380_v0 = vmul.f32 %v1378_v52, %v1374_v60 }
 0xac1   :  { %v1386_v3 = vadd.f32 %v1384_v63, %v1380_v0 }
 0xac3   :  { %v1387_v4 = vpack.c.bf16 %v1386_v3, %v1385_v2 }
 0xac5   :  { %3414 = vmatmul.mubr.msk.bf16.vlgmr.msra.gmra.mrb[20].mxu0 %vm675_vm1, %v1387_v4 }
 0xac6   :  { %3441 = vmatprep.mubr.msk.bf16.mxu0 %vm3872_vm3, %v3871_v34 }
 0xb98   :  { %v1445_v19 = vpop.f32.mrb[20].mxu0 }
 0xb99   :  { %v1446_v28 = vadd.f32 %v1445_v19, %v1395_v27  ;;  %v3415_v31 = vpop.f32.mrb[21].mxu0 }
 0xb9a   :  { %v1448_v20 = vpop.f32.mrb[22].mxu0 }
 0xb9b   :  { %v1454_v32 = vmul.f32 0.70710677, %v1446_v28  ;;  %v1449_v33 = vadd.f32 %v1448_v20, %v1395_v27  ;;  %v3416_v35 = vpop.f32.mrb[23].mxu0 }
 0xb9d   :  { %v1460_v37 = vand.u32 2147483647, %v1454_v32  ;;  %v1455_v38 = vmul.f32 0.70710677, %v1449_v33  ;;  %vm1456_vm11 = vcmp.ge.f32.partialorder %v1454_v32, 0.0 }
 0xb9f   :  { %v1462_v39 = vmul.f32 0.3275911, %v1460_v37  ;;  %v1461_v40 = vand.u32 2147483647, %v1455_v38  ;;  %v1488_v51 = vsub.f32 0.0, %v1460_v37  ;;  %vm1457_vm12 = vcmp.ge.f32.partialorder %v1455_v38, 0.0 }
 0xba1   :  { %v1464_v41 = vadd.f32 1.0, %v1462_v39  ;;  %v1463_v46 = vmul.f32 0.3275911, %v1461_v40  ;;  %v1489_v52 = vsub.f32 0.0, %v1461_v40  ;;  %v1490_v55 = vmul.f32 %v1488_v51, %v1460_v37 }
 0xba2   :  { %v3877_v51 = vmov -1.0  }
 0xba3   :  { %3805 = vrcp.f32 %v1464_v41  ;;  %v1465_v48 = vadd.f32 1.0, %v1463_v46  ;;  %v1491_v0 = vmul.f32 %v1489_v52, %v1461_v40  ;;  %v1492_v2 = vmul.f32 1.442695, %v1490_v55 }
 0xba4   :  { %v1458_v52 = vsel %vm1456_vm11, 1.0, %v3877_v51 }
 0xba5   :  { %3807 = vrcp.f32 %v1465_v48  ;;  %v1494_v14 = vmul.f32 1.442695, %v1491_v0  ;;  %v1459_v0 = vsel %vm1457_vm12, 1.0, %v3877_v51 }
 0xba6   :  { %3809 = vpow2.f32 %v1492_v2 }
 0xba7   :  { %3811 = vpow2.f32 %v1494_v14 }
 0xbad   :  { %v3806_v53 = vpop.eup %3805 }
 0xbae   :  { %v1470_v57 = vmul.f32 1.0614054, %v3806_v53 }
 0xbaf   :  { %v3808_v60 = vpop.eup %3807 }
 0xbb0   :  { %v1472_v63 = vadd.f32 -1.4531521, %v1470_v57  ;;  %v1471_v3 = vmul.f32 1.0614054, %v3808_v60  ;;  %v3810_v37 = vpop.eup %3809 }
 0xbb1   :  { %v3812_v46 = vpop.eup %3811 }
 0xbb2   :  { %v1474_v4 = vmul.f32 %v3806_v53, %v1472_v63  ;;  %v1473_v5 = vadd.f32 -1.4531521, %v1471_v3 }
 0xbb4   :  { %v1476_v6 = vadd.f32 1.4214138, %v1474_v4  ;;  %v1475_v15 = vmul.f32 %v3808_v60, %v1473_v5  ;;  %v1452_v4 = vmul.f32 0.5, %v1446_v28 }
 0xbb6   :  { %v1478_v21 = vmul.f32 %v3806_v53, %v1476_v6  ;;  %v1477_v22 = vadd.f32 1.4214138, %v1475_v15 }
 0xbb8   :  { %v1480_v23 = vadd.f32 -0.28449672, %v1478_v21  ;;  %v1479_v24 = vmul.f32 %v3808_v60, %v1477_v22 }
 0xbba   :  { %v1482_v27 = vmul.f32 %v3806_v53, %v1480_v23  ;;  %v1481_v19 = vadd.f32 -0.28449672, %v1479_v24 }
 0xbbc   :  { %v1484_v31 = vadd.f32 0.2548296, %v1482_v27  ;;  %v1483_v20 = vmul.f32 %v3808_v60, %v1481_v19 }
 0xbbe   :  { %v1486_v35 = vmul.f32 %v3806_v53, %v1484_v31  ;;  %v1485_v39 = vadd.f32 0.2548296, %v1483_v20  ;;  %v1453_v53 = vmul.f32 0.5, %v1449_v33 }
 0xbc0   :  { %v1496_v40 = vmul.f32 %v3810_v37, %v1486_v35  ;;  %v1487_v41 = vmul.f32 %v3808_v60, %v1485_v39  ;;  %v4465_v60 = vsub.s32 7, %v4167_v43  ;;  %v3782_v43 = vld [vmem:[%s4761_s11 + $0x48] sm:$0xff]  }
 0xbc2   :  { %v1498_v48 = vsub.f32 1.0, %v1496_v40  ;;  %v1497_v55 = vmul.f32 %v3812_v46, %v1487_v41  ;;  %v1526_v38 = vrot.slane %v4175_v45, %v4465_v60 }
 0xbc4   :  { %v1500_v57 = vmul.f32 %v1498_v48, %v1458_v52  ;;  %v1499_v63 = vsub.f32 1.0, %v1497_v55  ;;  %v3775_v48 = vld [vmem:[%s4758_s8 + $0x10] sm:$0xff]   ;;  %v3776_v52 = vld [vmem:[%s4758_s8 + $0x18] sm:$0xff]  }
 0xbc5   :  { %3438 = vmatpush3.bf16.msra.mxu0 %v3775_v48 }
 0xbc6   :  { %v1502_v2 = vadd.f32 1.0, %v1500_v57  ;;  %v1501_v3 = vmul.f32 %v1499_v63, %v1459_v0  ;;  %3439 = vmatprep.subr.bf16.mxu0 %v3871_v34 }
 0xbc8   :  { %v1503_v5 = vadd.f32 1.0, %v1501_v3  ;;  %v1504_v6 = vmul.f32 %v1502_v2, %v1452_v4  ;;  %v4494_v4 = vld [vmem:[%s4762_s12 + $0x8] sm:$0xff] }
 0xbc9   :  { %3440 = vmatpush3.bf16.msra.mxu0 %v3776_v52 }
 0xbca   :  { %v1505_v32 = vmul.f32 %v1503_v5, %v1453_v53  ;;  %3628 = vmatprep.subr.bf16.mxu0 %v3873_v59  ;;  %v1649_v53 = vrot.slane %v4494_v4, %v4170_v44 }
 0xbcc   :  { %v1506_v14 = vpack.c.bf16 %v1505_v32, %v1504_v6 }
 0xbce   :  { %3434 = vmatmul.mubr.bf16.vlgmr.msra.gmra.mrb[28].mxu1 %v1506_v14 }
 0xbcf   :  { %3468 = vmatprep.mubr.msk.f32.mxu1 %vm3872_vm3, %v3871_v34 }
 0xca1   :  { %v1609_v15 = vpop.f32.mrb[28].mxu1 }
 0xca2   :  { %v1610_v21 = vadd.f32 %v1609_v15, %v1526_v38  ;;  %v3435_v22 = vpop.f32.mrb[29].mxu1  ;;  %v1655_v15 = vrot.slane %v4494_v4, %v4180_v49 }
 0xca3   :  { %v1612_v23 = vpop.f32.mrb[30].mxu1 }
 0xca4   :  { %v4470_v28 = vadd.f32 %v1610_v21, %v4391_v8  ;;  %v1613_v33 = vadd.f32 %v1612_v23, %v1526_v38  ;;  %v3436_v24 = vpop.f32.mrb[31].mxu1 }
 0xca5   :  { %v1667_v24 = vrot.slane %v4494_v4, %v4188_v58 }
 0xca6   :  { %v4473_v27 = vadd.f32 %v1613_v33, %v4394_v16  ;;  %v1620_v19 = vsel %vm675_vm1, %v4470_v28, 0.0 }
 0xca7   :  { %1621 = vadd.xlane.f32.xlu0 %v1620_v19 }
 0xca8   :  { %v1623_v31 = vsel %vm679_vm2, %v4473_v27, 0.0 }
 0xca9   :  { %1624 = vadd.xlane.f32.xlu1 %v1623_v31 }
 0xd34   :  { %v1622_v45 = vpop.xlane.xlu0 %1621 }
 0xd35   :  { %v1626_v20 = vmul.f32 0.03125, %v1622_v45 }
 0xd36   :  { %v1625_v35 = vpop.xlane.xlu1 %1624 }
 0xd37   :  { %v1628_v37 = vsub.f32 %v4470_v28, %v1626_v20  ;;  %v1627_v8 = vmul.f32 0.03125, %v1625_v35 }
 0xd39   :  { %v1629_v39 = vsub.f32 %v4473_v27, %v1627_v8  ;;  %v1630_v40 = vmul.f32 %v1628_v37, %v1628_v37 }
 0xd3b   :  { %v1632_v16 = vsel %vm675_vm1, %v1630_v40, 0.0  ;;  %v1631_v41 = vmul.f32 %v1629_v39, %v1629_v39 }
 0xd3c   :  { %1633 = vadd.xlane.f32.xlu0 %v1632_v16 }
 0xd3d   :  { %v1635_v46 = vsel %vm679_vm2, %v1631_v41, 0.0 }
 0xd3e   :  { %1636 = vadd.xlane.f32.xlu1 %v1635_v46 }
 0xdc9   :  { %v1634_v55 = vpop.xlane.xlu0 %1633 }
 0xdca   :  { %v1638_v57 = vmul.f32 0.03125, %v1634_v55 }
 0xdcb   :  { %v1637_v63 = vpop.xlane.xlu1 %1636 }
 0xdcc   :  { %v1640_v0 = vadd.f32 1e-06, %v1638_v57  ;;  %v1639_v2 = vmul.f32 0.03125, %v1637_v63 }
 0xdce   :  { %3813 = vrsqrt.f32 %v1640_v0  ;;  %v1641_v3 = vadd.f32 1e-06, %v1639_v2 }
 0xdd0   :  { %3815 = vrsqrt.f32 %v1641_v3 }
 0xdd8   :  { %v3814_v5 = vpop.eup %3813 }
 0xdd9   :  { %v1644_v6 = vmul.f32 %v3814_v5, %v1628_v37 }
 0xdda   :  { %v3816_v32 = vpop.eup %3815 }
 0xddb   :  { %v1650_v14 = vmul.f32 %v1649_v53, %v1644_v6  ;;  %v1645_v38 = vmul.f32 %v3816_v32, %v1629_v39 }
 0xddd   :  { %v1651_v21 = vmul.f32 %v1649_v53, %v1645_v38  ;;  %v1656_v22 = vadd.f32 %v1655_v15, %v1650_v14 }
 0xddf   :  { %v1657_v23 = vadd.f32 %v1655_v15, %v1651_v21 }
 0xde1   :  { %v1658_v33 = vpack.c.bf16 %v1657_v23, %v1656_v22 }
 0xde3   :  { %3442 = vmatmul.mubr.msk.bf16.vlgmr.msra.gmra.mrb[24].mxu0 %vm675_vm1, %v1658_v33 }
 0xde4   :  { %3449 = vmatprep.mubr.msk.f32.mxu0 %vm3872_vm3, %v3871_v34 }
 0xeb6   :  { %v1717_v19 = vpop.f32.mrb[24].mxu0 }
 0xeb7   :  { %v3443_v31 = vpop.f32.mrb[25].mxu0  ;;  %v1718_v20 = vadd.f32 %v1717_v19, %v1667_v24 }
 0xeb8   :  { %v1720_v45 = vpop.f32.mrb[26].mxu0 }
 0xeb9   :  { %v1721_v35 = vadd.f32 %v1720_v45, %v1667_v24  ;;  %v3444_v37 = vpop.f32.mrb[27].mxu0  ;;  %v1724_v46 = vmul.f32 0.35355338, %v1718_v20 }
 0xebb   :  { %v3701_v8 = vpack.i.bf16 %v1721_v35, %v1718_v20  ;;  %v1725_v23 = vmul.f32 0.35355338, %v1721_v35 }
 0xebd   :  { %3702 = vrot.lane.b32.xlu0 %v3701_v8, %s3874_s23 }
 0xf2f   :  { %v3703_v39 = vpop.permute.xlu0 %3702 }
 0xf30   :  { %v3705_v40 = vunpack.i.h.bf16 %v3703_v39  ;;  %v3704_v16 = vunpack.i.l.bf16 %v3703_v39 }
 0xf32   :  { %v3629_v41 = vpack.c.bf16 %v3705_v40, %v3704_v16 }
 0xf34   :  { %3631 = vmatpush3.bf16.msk.msra.mxu0 %vm4199_vm6, %v3629_v41 }
 0xf37   :  { %3450 = vmatmul.mubr.msk.f32.vlgmr.msra.gmra.mrb[28].mxu0 %vm790_vm7, %v4208_v9 }
 0xf38   :  { %3452 = vmatprep.mubr.msk.f32.mxu0 %vm3872_vm3, %v3871_v34 }
 0xf3b   :  { %3453 = vmatmul.mubr.msk.f32.gmra.mrb[30].mxu0 %vm790_vm7, %v4217_v10 }
 0xf3c   :  { %3455 = vmatprep.mubr.msk.f32.mxu0 %vm3872_vm3, %v3871_v34 }
 0xf3f   :  { %3456 = vmatmul.mubr.msk.f32.gmra.mrb[32].mxu0 %vm790_vm7, %v4226_v11 }
 0xf40   :  { %3458 = vmatprep.mubr.msk.f32.mxu0 %vm3872_vm3, %v3871_v34 }
 0xf43   :  { %3459 = vmatmul.mubr.msk.f32.gmra.mrb[34].mxu0 %vm790_vm7, %v4235_v12 }
 0xf44   :  { %3461 = vmatprep.mubr.msk.f32.mxu0 %vm3872_vm3, %v3871_v34 }
 0xf47   :  { %3462 = vmatmul.mubr.msk.f32.gmra.mrb[36].mxu0 %vm790_vm7, %v4244_v13 }
 0xf48   :  { %3493 = vmatprep.mubr.msk.f32.mxu0 %vm675_vm1, %v1724_v46 }
0x100a   :  { %v1801_v48 = vpop.f32.mrb[28].mxu0 }
0x100b   :  { %v3451_v52 = vpop.f32.mrb[29].mxu0  ;;  %v1825_v57 = vmul.f32 %v1801_v48, %v4252_v17 }
0x100e   :  { %v1806_v55 = vpop.f32.mrb[30].mxu0 }
0x100f   :  { %v1826_v63 = vmul.f32 %v1806_v55, %v4257_v18  ;;  %v3454_v0 = vpop.f32.mrb[31].mxu0 }
0x1011   :  { %v3636_v2 = vpack.c.bf16 %v1826_v63, %v1825_v57 }
0x1012   :  { %v1811_v3 = vpop.f32.mrb[32].mxu0 }
0x1013   :  { %v3457_v53 = vpop.f32.mrb[33].mxu0  ;;  %3638 = vmatprep.subr.msk.bf16.mxu0 %vm4263_vm8, %v3636_v2  ;;  %v1827_v6 = vmul.f32 %v1811_v3, %v4272_v29 }
0x1014   :  { %3641 = vmatpush3.bf16.xpose.msk.msra.mxu0 %vm4263_vm8, %v3636_v2 }
0x1016   :  { %v1816_v5 = vpop.f32.mrb[34].mxu0 }
0x1017   :  { %v1828_v32 = vmul.f32 %v1816_v5, %v4279_v30  ;;  %v3460_v14 = vpop.f32.mrb[35].mxu0 }
0x1019   :  { %v3642_v38 = vpack.c.bf16 %v1828_v32, %v1827_v6 }
0x101a   :  { %v1821_v15 = vpop.f32.mrb[36].mxu0 }
0x101b   :  { %3644 = vmatprep.subr.msk.bf16.mxu0 %vm4263_vm8, %v3642_v38  ;;  %v1829_v21 = vmul.f32 %v1821_v15, %v4286_v36  ;;  %v3463_v22 = vpop.f32.mrb[37].mxu0 }
0x101c   :  { %3647 = vmatpush3.bf16.xpose.msk.msra.mxu0 %vm4263_vm8, %v3642_v38  ;;  %v2215_v22 = vrot.slane %v4494_v4, %v4386_v1 }
0x101d   :  { %3491 = vmatprep.subr.msk.mxu0 %vm675_vm1, %v1829_v21 }
0x1024   :  { %3492 = vmatpush3.xpose.msk.msra.mxu0 %vm675_vm1, %v1829_v21 }
0x1025   :  { %3649 = vmatprep.subr.bf16.mxu0 %v4318_v56 }
0x1027   :  { %3494 = vmatmul.mubr.msk.f32.vlgmr.msra.gmra.mrb[38].mxu0 %vm675_vm1, %v1725_v23 }
0x1028   :  { %3651 = vmatpush3.bf16.msra.mxu0 %v4318_v56 }
0x1029   :  { %3653 = vmatprep.subr.bf16.mxu0 %v4328_v61 }
0x102c   :  { %3655 = vmatpush3.bf16.msra.mxu0 %v4328_v61 }
0x102d   :  { %3504 = vmatprep.subr.mxu0 %v4335_v62 }
0x1030   :  { %3505 = vmatpush3.msra.mxu0 %v4335_v62 }
0x1031   :  { %3522 = vmatprep.subr.bf16.mxu0 %v3871_v34 }
0x10fa   :  { %v3495_v25 = vpop.f32.mrb[38].mxu0 }
0x10fb   :  { %v2025_v33 = vadd.f32 %v3495_v25, %v4299_v42  ;;  %v2019_v24 = vpop.f32.mrb[39].mxu0 }
0x10fc   :  { %v2020_v19 = vadd.f32 %v2019_v24, %v4304_v47 }
0x10fd   :  { %v2031_v31 = vsel %vm1106_vm9, %v2025_v33, -inf }
0x10fe   :  { %2032 = vmax.xlane.f32.xlu1 %v2031_v31  ;;  %v2028_v56 = vsel %vm1102_vm10, %v2020_v19, -inf }
0x1102   :  { %2029 = vmax.xlane.f32.xlu1 %v2028_v56 }
0x1113   :  { %3707 = vrot.lane.b32.xlu1 %v3701_v8, %s3876_s1 }
0x118b   :  { %v2033_v61 = vpop.xlane.xlu1 %2032 }
0x118c   :  { %v2035_v45 = vsub.f32 %v2025_v33, %v2033_v61 }
0x118e   :  { %v2038_v35 = vmul.f32 1.442695, %v2035_v45 }
0x118f   :  { %v2030_v20 = vpop.xlane.xlu1 %2029 }
0x1190   :  { %v2034_v62 = vsub.f32 %v2020_v19, %v2030_v20 }
0x1192   :  { %v2036_v37 = vmul.f32 1.442695, %v2034_v62 }
0x1193   :  { %v3708_v39 = vpop.permute.xlu1 %3707 }
0x1194   :  { %3817 = vpow2.f32 %v2036_v37  ;;  %v3710_v42 = vunpack.i.h.bf16 %v3708_v39  ;;  %v3709_v40 = vunpack.i.l.bf16 %v3708_v39 }
0x1195   :  { %3819 = vpow2.f32 %v2038_v35 }
0x1196   :  { %v3633_v47 = vpack.c.bf16 %v3710_v42, %v3709_v40 }
0x1198   :  { %3635 = vmatpush3.bf16.msk.msra.mxu1 %vm4199_vm6, %v3633_v47 }
0x119b   :  { %3469 = vmatmul.mubr.msk.f32.vlgmr.msra.gmra.mrb[32].mxu1 %vm790_vm7, %v4208_v9  ;;  %v3777_v9 = vld [vmem:[%s4759_s9 + $0x10] sm:$0xff]  }
0x119c   :  { %3471 = vmatprep.mubr.msk.f32.mxu1 %vm3872_vm3, %v3871_v34 }
0x119e   :  { %v3818_v8 = vpop.eup %3817 }
0x119f   :  { %v3820_v16 = vpop.eup %3819  ;;  %3472 = vmatmul.mubr.msk.f32.gmra.mrb[34].mxu1 %vm790_vm7, %v4217_v10  ;;  %3506 = vmatprep.mubr.msk.f32.mxu0 %vm1102_vm10, %v3818_v8 }
0x11a0   :  { %3507 = vmatmul.mubr.msk.f32.vlgmr.msra.gmra.mrb[40].mxu0 %vm1102_vm10, %v3820_v16  ;;  %3474 = vmatprep.mubr.msk.f32.mxu1 %vm3872_vm3, %v3871_v34 }
0x11a1   :  { %3526 = vmatprep.mubr.msk.bf16.mxu0 %vm3872_vm3, %v3871_v34  ;;  %3523 = vmatpush3.bf16.msra.mxu0 %v3777_v9  ;;  %v3780_v9 = vld [vmem:[%s4760_s10 + $0x18] sm:$0xff]  }
0x11a2   :  { %3524 = vmatprep.subr.bf16.mxu0 %v3871_v34 }
0x11a3   :  { %3475 = vmatmul.mubr.msk.f32.gmra.mrb[36].mxu1 %vm790_vm7, %v4226_v11 }
0x11a4   :  { %3477 = vmatprep.mubr.msk.f32.mxu1 %vm3872_vm3, %v3871_v34 }
0x11a7   :  { %3478 = vmatmul.mubr.msk.f32.gmra.mrb[38].mxu1 %vm790_vm7, %v4235_v12 }
0x11a8   :  { %3480 = vmatprep.mubr.msk.f32.mxu1 %vm3872_vm3, %v3871_v34 }
0x11ab   :  { %3481 = vmatmul.mubr.msk.f32.gmra.mrb[40].mxu1 %vm790_vm7, %v4244_v13 }
0x126e   :  { %v1903_v10 = vpop.f32.mrb[32].mxu1 }
0x126f   :  { %v3470_v11 = vpop.f32.mrb[33].mxu1  ;;  %v1927_v46 = vmul.f32 %v1903_v10, %v4252_v17 }
0x1272   :  { %v1908_v41 = vpop.f32.mrb[34].mxu1 }
0x1273   :  { %v1928_v12 = vmul.f32 %v1908_v41, %v4257_v18  ;;  %v3473_v48 = vpop.f32.mrb[35].mxu1  ;;  %v3508_v52 = vpop.f32.mrb[40].mxu0 }
0x1274   :  { %v2112_v55 = vpop.f32.mrb[41].mxu0 }
0x1275   :  { %v3656_v57 = vpack.c.bf16 %v1928_v12, %v1927_v46  ;;  %3821 = vrcp.f32 %v2112_v55  ;;  %v2303_v55 = vrot.slane %v4494_v4, %v1377_v50  ;;  %v3781_v50 = vld [vmem:[%s4761_s11 + $0x40] sm:$0xff]  }
0x1276   :  { %3823 = vrcp.f32 %v3508_v52  ;;  %v1913_v13 = vpop.f32.mrb[36].mxu1 }
0x1277   :  { %v3476_v63 = vpop.f32.mrb[37].mxu1  ;;  %3657 = vmatprep.subr.bf16.mxu1 %v3656_v57  ;;  %v1929_v2 = vmul.f32 %v1913_v13, %v4272_v29  ;;  %v3778_v29 = vld [vmem:[%s4759_s9 + $0x18] sm:$0xff]  }
0x1278   :  { %3659 = vmatpush3.bf16.msra.mxu1 %v3656_v57  ;;  %3525 = vmatpush3.bf16.msra.mxu0 %v3778_v29 }
0x1279   :  { %3530 = vmatprep.subr.bf16.mxu0 %v3871_v34 }
0x127a   :  { %v1918_v0 = vpop.f32.mrb[38].mxu1 }
0x127b   :  { %v1930_v3 = vmul.f32 %v1918_v0, %v4279_v30  ;;  %v3479_v53 = vpop.f32.mrb[39].mxu1 }
0x127d   :  { %v3660_v5 = vpack.c.bf16 %v1930_v3, %v1929_v2  ;;  %v2309_v2 = vrot.slane %v4494_v4, %v1383_v54  ;;  %v3783_v54 = vld [vmem:[%s4761_s11 + $0x50] sm:$0xff]  }
0x127e   :  { %v1923_v17 = vpop.f32.mrb[40].mxu1 }
0x127f   :  { %v3822_v6 = vpop.eup %3821  ;;  %3661 = vmatprep.subr.bf16.mxu1 %v3660_v5  ;;  %v1931_v18 = vmul.f32 %v1923_v17, %v4286_v36  ;;  %v3482_v32 = vpop.f32.mrb[41].mxu1 }
0x1280   :  { %v3824_v14 = vpop.eup %3823  ;;  %3663 = vmatpush3.bf16.msra.mxu1 %v3660_v5  ;;  %v2122_v38 = vmul.f32 %v3822_v6, %v3818_v8  ;;  %v3784_v6 = vld [vmem:[%s4761_s11 + $0x58] sm:$0xff]   ;;  %v3786_v32 = vld [vmem:[%s4761_s11 + $0x68] sm:$0xff]  }
0x1281   :  { %3517 = vmatprep.subr.mxu1 %v1931_v18  ;;  %v2124_v15 = vmul.f32 %v3824_v14, %v3820_v16  ;;  %v3779_v16 = vld [vmem:[%s4760_s10 + $0x10] sm:$0xff]   ;;  %s3879_s10 = smov 127  }
0x1282   :  { %3519 = vmatprep.mubr.msk.f32.mxu1 %vm1102_vm10, %v2122_v38  ;;  %v3787_v14 = vld [vmem:[%s4761_s11 + $0x70] sm:$0xff]   ;;  %v3788_v38 = vld [vmem:[%s4761_s11 + $0x78] sm:$0xff]  }
0x1284   :  { %3518 = vmatpush3.msra.mxu1 %v1931_v18  ;;  %v3785_v18 = vld [vmem:[%s4761_s11 + $0x60] sm:$0xff]  }
0x1285   :  { %3520 = vmatmul.mubr.msk.f32.vlgmr.msra.gmra.mrb[42].mxu1 %vm1102_vm10, %v2124_v15  ;;  %3538 = vmatprep.subr.bf16.mxu1 %v3871_v34  ;;  %v2321_v15 = vrot.slane %v4494_v4, %v4456_v26 }
0x1286   :  { %3554 = vmatprep.mubr.msk.bf16.mxu1 %vm3872_vm3, %v3871_v34  ;;  %3539 = vmatpush3.bf16.msra.mxu1 %v3781_v50 }
0x1287   :  { %3540 = vmatprep.subr.bf16.mxu1 %v3871_v34 }
0x128a   :  { %3541 = vmatpush3.bf16.msra.mxu1 %v3782_v43 }
0x128b   :  { %3542 = vmatprep.subr.bf16.mxu1 %v3871_v34 }
0x128e   :  { %3543 = vmatpush3.bf16.msra.mxu1 %v3783_v54 }
0x128f   :  { %3544 = vmatprep.subr.bf16.mxu1 %v3871_v34 }
0x1292   :  { %3545 = vmatpush3.bf16.msra.mxu1 %v3784_v6 }
0x1293   :  { %3546 = vmatprep.subr.bf16.mxu1 %v3871_v34 }
0x1296   :  { %3547 = vmatpush3.bf16.msra.mxu1 %v3785_v18 }
0x1297   :  { %3548 = vmatprep.subr.bf16.mxu1 %v3871_v34 }
0x129a   :  { %3549 = vmatpush3.bf16.msra.mxu1 %v3786_v32 }
0x129b   :  { %3550 = vmatprep.subr.bf16.mxu1 %v3871_v34 }
0x129e   :  { %3551 = vmatpush3.bf16.msra.mxu1 %v3787_v14 }
0x129f   :  { %3552 = vmatprep.subr.bf16.mxu1 %v3871_v34 }
0x12a2   :  { %3553 = vmatpush3.bf16.msra.mxu1 %v3788_v38 }
0x1358   :  { %v3521_v30 = vpop.f32.mrb[42].mxu1 }
0x1359   :  { %v2197_v36 = vpop.f32.mrb[43].mxu1 }
0x135a   :  { %v2206_v21 = vpack.c.bf16 %v3521_v30, %v2197_v36 }
0x135c   :  { %3527 = vmatmul.mubr.msk.bf16.vlgmr.msra.gmra.mrb[44].mxu0 %vm675_vm1, %v2206_v21 }
0x135d   :  { %3534 = vmatprep.mubr.msk.bf16.mxu0 %vm3872_vm3, %v3871_v34  ;;  %3531 = vmatpush3.bf16.msra.mxu0 %v3779_v16 }
0x135e   :  { %3532 = vmatprep.subr.bf16.mxu0 %v3871_v34 }
0x1361   :  { %3533 = vmatpush3.bf16.msra.mxu0 %v3780_v9 }
0x1362   :  { %3664 = vmatprep.subr.bf16.mxu0 %v3873_v59 }
0x142f   :  { %v2265_v23 = vpop.f32.mrb[44].mxu0 }
0x1430   :  { %v2266_v25 = vadd.f32 %v2265_v23, %v2215_v22  ;;  %v3528_v33 = vpop.f32.mrb[45].mxu0 }
0x1431   :  { %v2268_v24 = vpop.f32.mrb[46].mxu0 }
0x1432   :  { %v4603_v19 = vadd.f32 %v2266_v25, %v4470_v28  ;;  %v2269_v31 = vadd.f32 %v2268_v24, %v2215_v22  ;;  %v3529_v56 = vpop.f32.mrb[47].mxu0 }
0x1434   :  { %v4606_v61 = vadd.f32 %v2269_v31, %v4473_v27  ;;  %v2274_v45 = vsel %vm675_vm1, %v4603_v19, 0.0 }
0x1435   :  { %2275 = vadd.xlane.f32.xlu0 %v2274_v45 }
0x1436   :  { %v2277_v20 = vsel %vm679_vm2, %v4606_v61, 0.0 }
0x1437   :  { %2278 = vadd.xlane.f32.xlu1 %v2277_v20 }
0x14c2   :  { %v2276_v62 = vpop.xlane.xlu0 %2275 }
0x14c3   :  { %v2280_v35 = vmul.f32 0.03125, %v2276_v62 }
0x14c4   :  { %v2279_v37 = vpop.xlane.xlu1 %2278 }
0x14c5   :  { %v2282_v39 = vsub.f32 %v4603_v19, %v2280_v35  ;;  %v2281_v28 = vmul.f32 0.03125, %v2279_v37 }
0x14c7   :  { %v2283_v42 = vsub.f32 %v4606_v61, %v2281_v28  ;;  %v2284_v40 = vmul.f32 %v2282_v39, %v2282_v39 }
0x14c9   :  { %v2286_v27 = vsel %vm675_vm1, %v2284_v40, 0.0  ;;  %v2285_v47 = vmul.f32 %v2283_v42, %v2283_v42 }
0x14ca   :  { %2287 = vadd.xlane.f32.xlu0 %v2286_v27 }
0x14cb   :  { %v2289_v8 = vsel %vm679_vm2, %v2285_v47, 0.0 }
0x14ce   :  { %2290 = vadd.xlane.f32.xlu0 %v2289_v8 }
0x1557   :  { %v2288_v10 = vpop.xlane.xlu0 %2287 }
0x1558   :  { %v2292_v11 = vmul.f32 0.03125, %v2288_v10 }
0x155a   :  { %v2294_v41 = vadd.f32 1e-06, %v2292_v11 }
0x155b   :  { %v2291_v46 = vpop.xlane.xlu0 %2290 }
0x155c   :  { %3825 = vrsqrt.f32 %v2294_v41  ;;  %v2293_v12 = vmul.f32 0.03125, %v2291_v46 }
0x155e   :  { %v2295_v48 = vadd.f32 1e-06, %v2293_v12 }
0x1560   :  { %3827 = vrsqrt.f32 %v2295_v48 }
0x1566   :  { %v3826_v52 = vpop.eup %3825 }
0x1567   :  { %v2298_v57 = vmul.f32 %v3826_v52, %v2282_v39 }
0x1569   :  { %v2304_v63 = vmul.f32 %v2303_v55, %v2298_v57 }
0x156a   :  { %v3828_v13 = vpop.eup %3827 }
0x156b   :  { %v2299_v0 = vmul.f32 %v3828_v13, %v2283_v42  ;;  %v2310_v53 = vadd.f32 %v2309_v2, %v2304_v63 }
0x156d   :  { %v2305_v3 = vmul.f32 %v2303_v55, %v2299_v0 }
0x156f   :  { %v2311_v5 = vadd.f32 %v2309_v2, %v2305_v3 }
0x1571   :  { %v2312_v17 = vpack.c.bf16 %v2311_v5, %v2310_v53 }
0x1573   :  { %3535 = vmatmul.mubr.msk.bf16.vlgmr.msra.gmra.mrb[48].mxu0 %vm675_vm1, %v2312_v17 }
0x1574   :  { %3562 = vmatprep.mubr.msk.f32.mxu0 %vm3872_vm3, %v3871_v34 }
0x1646   :  { %v2371_v29 = vpop.f32.mrb[48].mxu0 }
0x1647   :  { %v2372_v30 = vadd.f32 %v2371_v29, %v2321_v15  ;;  %v3536_v36 = vpop.f32.mrb[49].mxu0 }
0x1648   :  { %v2374_v21 = vpop.f32.mrb[50].mxu0 }
0x1649   :  { %v2380_v22 = vmul.f32 0.70710677, %v2372_v30  ;;  %v2375_v23 = vadd.f32 %v2374_v21, %v2321_v15  ;;  %v3537_v25 = vpop.f32.mrb[51].mxu0  ;;  %v2378_v29 = vmul.f32 0.5, %v2372_v30 }
0x164b   :  { %v2386_v33 = vand.u32 2147483647, %v2380_v22  ;;  %v2381_v24 = vmul.f32 0.70710677, %v2375_v23  ;;  %vm2382_vm13 = vcmp.ge.f32.partialorder %v2380_v22, 0.0  ;;  %v2379_v36 = vmul.f32 0.5, %v2375_v23 }
0x164c   :  { %v2384_v54 = vsel %vm2382_vm13, 1.0, %v3877_v51  ;;  %v2555_v23 = vld [vmem:[%s4763_s13] sm:$0x3] }
0x164d   :  { %v2388_v31 = vmul.f32 0.3275911, %v2386_v33  ;;  %v2387_v56 = vand.u32 2147483647, %v2381_v24  ;;  %v2414_v35 = vsub.f32 0.0, %v2386_v33  ;;  %vm2383_vm14 = vcmp.ge.f32.partialorder %v2381_v24, 0.0 }
0x164e   :  { %v2385_v14 = vsel %vm2383_vm14, 1.0, %v3877_v51 }
0x164f   :  { %v2390_v45 = vadd.f32 1.0, %v2388_v31  ;;  %v2389_v20 = vmul.f32 0.3275911, %v2387_v56  ;;  %v2415_v37 = vsub.f32 0.0, %v2387_v56  ;;  %v2416_v28 = vmul.f32 %v2414_v35, %v2386_v33 }
0x1650   :  { %v2453_v31 = vrot.slane %v4494_v4, %v4465_v60 }
0x1651   :  { %3829 = vrcp.f32 %v2390_v45  ;;  %v2391_v62 = vadd.f32 1.0, %v2389_v20  ;;  %v2417_v47 = vmul.f32 %v2415_v37, %v2387_v56  ;;  %v2418_v8 = vmul.f32 1.442695, %v2416_v28 }
0x1653   :  { %3831 = vrcp.f32 %v2391_v62  ;;  %v2420_v41 = vmul.f32 1.442695, %v2417_v47  ;;  %v3110_v47 = vld [vmem:[%s4764_s14 + $0x28] sm:$0xff] }
0x1654   :  { %3833 = vpow2.f32 %v2418_v8 }
0x1655   :  { %3835 = vpow2.f32 %v2420_v41 }
0x165b   :  { %v3830_v39 = vpop.eup %3829 }
0x165c   :  { %v2396_v42 = vmul.f32 1.0614054, %v3830_v39 }
0x165d   :  { %v3832_v40 = vpop.eup %3831 }
0x165e   :  { %v2398_v27 = vadd.f32 -1.4531521, %v2396_v42  ;;  %v2397_v16 = vmul.f32 1.0614054, %v3832_v40  ;;  %v3834_v3 = vpop.eup %3833 }
0x165f   :  { %v3836_v50 = vpop.eup %3835 }
0x1660   :  { %v2400_v9 = vmul.f32 %v3830_v39, %v2398_v27  ;;  %v2399_v10 = vadd.f32 -1.4531521, %v2397_v16  ;;  %v3109_v27 = vld [vmem:[%s4764_s14 + $0x20] sm:$0xff]  ;;  %v3111_v16 = vld [vmem:[%s4764_s14 + $0x30] sm:$0xff] }
0x1661   :  { %v3669_v8 = vpack.c.bf16 %v3110_v47, %v3109_v27 }
0x1662   :  { %v2402_v11 = vadd.f32 1.4214138, %v2400_v9  ;;  %v2401_v46 = vmul.f32 %v3832_v40, %v2399_v10  ;;  %v3112_v9 = vld [vmem:[%s4764_s14 + $0x38] sm:$0xff] }
0x1663   :  { %v3672_v10 = vpack.c.bf16 %v3112_v9, %v3111_v16 }
0x1664   :  { %v2404_v12 = vmul.f32 %v3830_v39, %v2402_v11  ;;  %v2403_v48 = vadd.f32 1.4214138, %v2401_v46 }
0x1666   :  { %v2406_v52 = vadd.f32 -0.28449672, %v2404_v12  ;;  %v2405_v55 = vmul.f32 %v3832_v40, %v2403_v48  ;;  %v4700_v12 = vld [vmem:[%s4765_s15] sm:$0xff]  ;;  %s3878_s15 = smov 126  }
0x1667   :  { %v2648_v48 = vrot.slane %v4700_v12, %v4170_v44  ;;  %v2658_v44 = vrot.slane %v4700_v12, %v4465_v60 }
0x1668   :  { %v2408_v57 = vmul.f32 %v3830_v39, %v2406_v52  ;;  %v2407_v13 = vadd.f32 -0.28449672, %v2405_v55 }
0x166a   :  { %v2410_v63 = vadd.f32 0.2548296, %v2408_v57  ;;  %v2409_v0 = vmul.f32 %v3832_v40, %v2407_v13  ;;  %v2653_v57 = vrot.slane %v4700_v12, %v4180_v49 }
0x166c   :  { %v2412_v2 = vmul.f32 %v3830_v39, %v2410_v63  ;;  %v2411_v53 = vadd.f32 0.2548296, %v2409_v0  ;;  %v2738_v0 = vrot.slane %v4700_v12, 4 }
0x166e   :  { %v2422_v5 = vmul.f32 %v3834_v3, %v2412_v2  ;;  %v2413_v17 = vmul.f32 %v3832_v40, %v2411_v53 }
0x1670   :  { %v2424_v43 = vsub.f32 1.0, %v2422_v5  ;;  %v2423_v6 = vmul.f32 %v3836_v50, %v2413_v17  ;;  %v2736_v5 = vrot.slane %v4700_v12, %v4456_v26 }
0x1672   :  { %v2426_v18 = vmul.f32 %v2424_v43, %v2384_v54  ;;  %v2425_v32 = vsub.f32 1.0, %v2423_v6 }
0x1674   :  { %v2428_v38 = vadd.f32 1.0, %v2426_v18  ;;  %v2427_v15 = vmul.f32 %v2425_v32, %v2385_v14 }
0x1676   :  { %v2429_v21 = vadd.f32 1.0, %v2427_v15  ;;  %v2430_v25 = vmul.f32 %v2428_v38, %v2378_v29 }
0x1678   :  { %v2431_v33 = vmul.f32 %v2429_v21, %v2379_v36  ;;  %v3880_v36 = vmov 0   ;;  %v2546_v21 = vld [vmem:[%s4764_s14] sm:$0xff] }
0x1679   :  { %3711 = vset.pattern.permute.xlu1 %v3880_v36  ;;  %3712 = vset.pattern.permute.xlu0 %v3880_v36 }
0x167a   :  { %v2432_v22 = vpack.c.bf16 %v2431_v33, %v2430_v25  ;;  %v2547_v25 = vld [vmem:[%s4764_s14 + $0x8] sm:$0xff] }
0x167b   :  { %v3675_v33 = vpack.c.bf16 %v2547_v25, %v2546_v21 }
0x167c   :  { %3555 = vmatmul.mubr.bf16.vlgmr.msra.gmra.mrb[44].mxu1 %v2432_v22  ;;  %v2549_v22 = vld [vmem:[%s4764_s14 + $0x18] sm:$0xff] }
0x174f   :  { %v2536_v56 = vpop.f32.mrb[44].mxu1 }
0x1750   :  { %v2537_v45 = vadd.f32 %v2536_v56, %v2453_v31  ;;  %v3556_v24 = vpop.f32.mrb[45].mxu1 }
0x1751   :  { %v2539_v20 = vpop.f32.mrb[46].mxu1 }
0x1752   :  { %v2540_v62 = vadd.f32 %v2539_v20, %v2453_v31  ;;  %v3557_v35 = vpop.f32.mrb[47].mxu1  ;;  %v2543_v51 = vadd.f32 %v2537_v45, %v4603_v19 }
0x1754   :  { %v2544_v37 = vadd.f32 %v2540_v62, %v4606_v61 }
0x1756   :  { %v3665_v30 = vpack.c.bf16 %v2544_v37, %v2543_v51 }
0x1758   :  { %3667 = vmatpush3.bf16.msk.msra.mxu0 %vm4199_vm6, %v3665_v30 }
0x1759   :  { %3668 = vmatprep.subr.bf16.mxu0 %v3873_v59 }
0x175b   :  { %3563 = vmatmul.mubr.msk.f32.vlgmr.msra.gmra.mrb[42].mxu0 %vm790_vm7, %v2555_v23 }
0x175c   :  { %3573 = vmatprep.mubr.msk.f32.mxu0 %vm3872_vm3, %v3871_v34  ;;  %3670 = vmatpush3.bf16.msra.mxu0 %v3669_v8 }
0x175d   :  { %3671 = vmatprep.subr.bf16.mxu0 %v3873_v59 }
0x1760   :  { %3673 = vmatpush3.bf16.msra.mxu0 %v3672_v10 }
0x1761   :  { %3576 = vmatprep.subr.mxu0 %v3871_v34 }
0x182e   :  { %v2628_v4 = vpop.f32.mrb[42].mxu0 }
0x182f   :  { %v2632_v19 = vsel %vm679_vm2, %v2628_v4, 0.0  ;;  %v3564_v39 = vpop.f32.mrb[43].mxu0 }
0x1830   :  { %2633 = vadd.xlane.f32.xlu0 %v2632_v19 }
0x18bd   :  { %v2634_v61 = vpop.xlane.xlu0 %2633 }
0x18be   :  { %v2635_v28 = vmul.f32 0.03125, %v2634_v61 }
0x18c0   :  { %v2636_v7 = vsub.f32 %v2628_v4, %v2635_v28 }
0x18c2   :  { %v2637_v42 = vmul.f32 %v2636_v7, %v2636_v7 }
0x18c4   :  { %v2638_v40 = vsel %vm679_vm2, %v2637_v42, 0.0 }
0x18c5   :  { %2639 = vadd.xlane.f32.xlu1 %v2638_v40 }
0x1952   :  { %v2640_v11 = vpop.xlane.xlu1 %2639 }
0x1953   :  { %v2641_v41 = vmul.f32 0.03125, %v2640_v11 }
0x1955   :  { %v2642_v46 = vadd.f32 1e-06, %v2641_v41 }
0x1957   :  { %3837 = vrsqrt.f32 %v2642_v46 }
0x1961   :  { %v3838_v52 = vpop.eup %3837 }
0x1962   :  { %v2644_v55 = vmul.f32 %v3838_v52, %v2636_v7 }
0x1964   :  { %v2649_v13 = vmul.f32 %v2648_v48, %v2644_v55 }
0x1966   :  { %v2654_v63 = vadd.f32 %v2653_v57, %v2649_v13 }
0x1968   :  { %3574 = vmatmul.mubr.msk.f32.vlgmr.msra.gmra.mrb[52].mxu0 %vm675_vm1, %v2654_v63 }
0x1969   :  { %3578 = vmatprep.mubr.msk.f32.mxu0 %vm3872_vm3, %v3871_v34  ;;  %3577 = vmatpush3.msk.msra.mxu0 %vm806_vm4, %v2738_v0 }
0x196a   :  { %3674 = vmatprep.subr.bf16.mxu0 %v3873_v59 }
0x1a3b   :  { %v2728_v2 = vpop.f32.mrb[52].mxu0 }
0x1a3c   :  { %v2729_v3 = vadd.f32 %v2728_v2, %v2658_v44  ;;  %v3575_v53 = vpop.f32.mrb[53].mxu0 }
0x1a3e   :  { %v2732_v49 = vmax.f32 %v2729_v3, 0.0 }
0x1a40   :  { %3579 = vmatmul.mubr.msk.f32.vlgmr.msra.gmra.mrb[54].mxu0 %vm2739_vm15, %v2732_v49 }
0x1a41   :  { %3589 = vmatprep.mubr.msk.f32.mxu0 %vm3872_vm3, %v3871_v34  ;;  %v2833_v34 = vrot.slane %v4700_v12, %v4386_v1  ;;  %v2548_v1 = vld [vmem:[%s4764_s14 + $0x10] sm:$0xff]  ;;  %3676 = vmatpush3.bf16.msra.mxu0 %v3675_v33  ;;  %s3881_s14 = smov [#allocation2]  }
0x1a42   :  { %v3678_v31 = vpack.c.bf16 %v2549_v22, %v2548_v1  ;;  %3677 = vmatprep.subr.bf16.mxu0 %v3873_v59  ;;  %v2861_v59 = vrot.slane %v4700_v12, %v4188_v58  ;;  %s2942_s20 = sshll.u32 %s3881_s14, 4  ;;  %s2943_s20 = int_to_ptr.vmem [resolvable:$true] %s2942_s20 }
0x1a43   :  { %s3847_s21 = scalar_lea.vmem %s2943_s20, 32  ;;  %p3852_p1 = scmp.lt.s32.totalorder %s2943_s20, %s2943_s20 }
0x1a44   :  { %p3848_p0 = scmp.ne.s32.totalorder %s2943_s20, %s3847_s21  ;;  %p3853_p2 = scmp.lt.s32.totalorder %s3847_s21, %s3847_s21 }
0x1a45   :  { %3679 = vmatpush3.bf16.msra.mxu0 %v3678_v31 }
0x1a46   :  { %p3854_p3 = por %p3853_p2, %p3852_p1 }
0x1a48   :  { %p3855_p4 = pnand %p3854_p3, %p3848_p0 }
0x1b13   :  { %v2811_v17 = vpop.f32.mrb[54].mxu0 }
0x1b14   :  { %v2812_v50 = vadd.f32 %v2811_v17, %v2736_v5  ;;  %v3580_v43 = vpop.f32.mrb[55].mxu0 }
0x1b16   :  { %v3118_v54 = vmul.f32 -2.0, %v2812_v50 }
0x1b18   :  { %v2817_v6 = vmul.f32 1.442695, %v3118_v54 }
0x1b1a   :  { %3839 = vpow2.f32 %v2817_v6 }
0x1b24   :  { %v3840_v18 = vpop.eup %3839 }
0x1b25   :  { %v2819_v60 = vadd.f32 1.0, %v3840_v18 }
0x1b27   :  { %3841 = vrcp.f32 %v2819_v60 }
0x1b31   :  { %v3842_v32 = vpop.eup %3841 }
0x1b32   :  { %v2822_v14 = vmul.f32 %v3842_v32, %v2654_v63 }
0x1b34   :  { %v2827_v38 = vsel %vm679_vm2, %v2822_v14, -inf  ;;  %v2823_v15 = vsel %vm679_vm2, %v2822_v14, 0.0 }
0x1b35   :  { %2828 = vmax.xlane.f32.xlu0 %v2827_v38  ;;  %2824 = vadd.xlane.f32.xlu1 %v2823_v15 }
0x1b46   :  { %2842 = vrot.lane.b32.xlu1 %v2833_v34, %s3878_s15 }
0x1bc2   :  { %v2829_v26 = vpop.xlane.xlu0 %2828  ;;  %v2825_v56 = vpop.xlane.xlu1 %2824 }
0x1bc3   :  { %v2835_v29 = vmul.f32 %v2833_v34, %v2829_v26  ;;  %v2826_v45 = vmul.f32 0.03125, %v2825_v56 }
0x1bc5   :  { %2837 = vrot.lane.b32.xlu0 %v2835_v29, %s3879_s10  ;;  %v2834_v24 = vmul.f32 %v2833_v34, %v2826_v45 }
0x1bc6   :  { %v2843_v62 = vpop.permute.xlu1 %2842 }
0x1c37   :  { %v2838_v20 = vpop.permute.xlu0 %2837 }
0x1c38   :  { %v2840_v35 = vadd.f32 %v2838_v20, %v2834_v24 }
0x1c3a   :  { %v2845_v51 = vadd.f32 %v2843_v62, %v2840_v35 }
0x1c3c   :  { %v3119_v37 = vmul.f32 -1.442695, %v2845_v51 }
0x1c3e   :  { %3843 = vpow2.f32 %v3119_v37 }
0x1c48   :  { %v3844_v30 = vpop.eup %3843 }
0x1c49   :  { %v2849_v23 = vadd.f32 1.0, %v3844_v30 }
0x1c4b   :  { %3845 = vrcp.f32 %v2849_v23 }
0x1c55   :  { %v3846_v4 = vpop.eup %3845 }
0x1c56   :  { %2854 = vperm.xlu1 %3711, %v3846_v4  }
0x1cd5   :  { %v2855_v19 = vpop.permute.xlu1 %2854 }
0x1cd6   :  { %v2857_v39 = vmul.f32 %v2855_v19, %v2822_v14 }
0x1cd8   :  { %3590 = vmatmul.mubr.msk.f32.vlgmr.msra.gmra.mrb[56].mxu0 %vm675_vm1, %v2857_v39 }
0x1dab   :  { %v2931_v61 = vpop.f32.mrb[56].mxu0 }
0x1dac   :  { %v2932_v28 = vadd.f32 %v2931_v61, %v2861_v59  ;;  %v3591_v7 = vpop.f32.mrb[57].mxu0 }
0x1dae   :  { %2935 = vst [vmem:[#allocation2] sm:$0x3] %v2932_v28 }
0x1daf   :  { %3858 = shalt.err (!%p3855_p4)
}
0x1db0   :  { %s3859_s25 = scalar_lea.hbm %s4766_s16, 32 }
0x1db1   :  { %p3860_p5 = scmp.ne.s32.totalorder %s4766_s16, %s3859_s25  ;;  %p3863_p6 = scmp.lt.u32.totalorder %s3859_s25, %s4766_s16 }
0x1db3   :  { %p3865_p7 = pnand %p3863_p6, %p3860_p5 }
0x1db5   :  { %3868 = shalt.err (!%p3865_p7)
}
0x1db6   :  { %2945 = dma.vmem_to_hbm [thread:$0]  %s2943_s20, 32, %s4766_s16, [#allocation3]  }
0x1db7   :  { %3869 = dma.done.wait [#allocation3], 32  }
0x1db8   :  { %3870 = vsyncadd [#allocation3], 4294967264 }
0x1db9   :  { %2949 = vsyncpa [#allocation3], 1 }

</bundles_post_ra>
